<compile_context>
chip_gen: v7x
topology: tpu7x:2x2x1
jax: 0.10.0
libtpu: 0.0.40
codegen_flags: <defaults>
</compile_context>

<pallas_src>
import jax
import jax.numpy as jnp
from jax.experimental import pallas as pl
from jax.experimental.pallas import tpu as pltpu


def _round_up(x, m):
    return ((x + m - 1) // m) * m


def _sigmoid(z):
    # exp and the approximate reciprocal both issue to the EUP slot, which is
    # otherwise idle in this memory-bound kernel (frees VALU slots on v5e).
    return pl.reciprocal(1.0 + jnp.exp(-z), approx=True)


# --------------- Path A: single column block (w2 resident in VMEM) ----------
def _gnn_fused_kernel(x_ref, w1_ref, b1_ref, w2_ref, b2_ref, o_ref):
    x = x_ref[...].astype(jnp.bfloat16)            # in-kernel cast, no HBM pre-pass
    h = jnp.dot(x, w1_ref[...], preferred_element_type=jnp.float32)
    h = _sigmoid(h + b1_ref[...])
    # Dropout(p=0.5) in eval mode -> identity.
    y = jnp.dot(h.astype(jnp.bfloat16), w2_ref[...],
                preferred_element_type=jnp.float32)
    o_ref[...] = _sigmoid(y + b2_ref[...]).astype(o_ref.dtype)


# --------------- Path B: column-tiled fallback (very large exp_num) ---------
def _gnn_coltiled_kernel(x_ref, w1_ref, b1_ref, w2_ref, b2_ref, o_ref, h_ref):
    # Layer 1 recomputed only when the row block changes; cached as bf16 in
    # VMEM scratch and reused for every column block j of the same row block.
    # NOTE: this cache requires j to be the innermost, sequentially iterated
    # ('arbitrary') grid axis -- do not mark j 'parallel' with this kernel.
    @pl.when(pl.program_id(1) == 0)
    def _():
        x = x_ref[...].astype(jnp.bfloat16)
        h = jnp.dot(x, w1_ref[...], preferred_element_type=jnp.float32)
        h_ref[...] = _sigmoid(h + b1_ref[...]).astype(h_ref.dtype)

    y = jnp.dot(h_ref[...], w2_ref[...], preferred_element_type=jnp.float32)
    o_ref[...] = _sigmoid(y + b2_ref[...]).astype(o_ref.dtype)


def exer_know_gnn_forward(x, w1, b1, w2, b2, *, row_tile=None, col_tile=None,
                          out_dtype=jnp.float32):
    """x: [N, know_num]; w1: [know_num, 256]; b1: [256]; w2: [256, exp_num];
    b2: [exp_num]  ->  [N, exp_num] in `out_dtype` (pass jnp.bfloat16 to halve
    output writeback if the consumer tolerates it)."""
    n, know_num = x.shape
    hidden = w1.shape[1]                 # 256
    exp_num = w2.shape[1]
    out_bytes = jnp.dtype(out_dtype).itemsize

    # ---- generation-aware VMEM budget --------------------------------------
    try:
        vmem_cap = int(pltpu.get_tpu_info().vmem_capacity_bytes)
    except Exception:                    # pragma: no cover - conservative default
        vmem_cap = 64 * 1024 * 1024      # v7x per-TensorCore
    budget = min(int(0.5 * vmem_cap), 80 * 1024 * 1024)

    # ---- path / column-tile selection ---------------------------------------
    if col_tile is not None:
        col_tile = min(_round_up(col_tile, 128), _round_up(exp_num, 128))
        single_col = col_tile >= exp_num
    else:
        # Collapse the column axis whenever bf16 w2 (256 * exp_num * 2B) fits
        # comfortably in VMEM; only very large exp_num falls back to tiling.
        single_col = hidden * exp_num * 2 <= 12 * 1024 * 1024
        col_tile = None if single_col else 512

    # ---- row-tile selection (bigger on 128 MiB v5e/v6e, tighter on 64 MiB v7x)
    if row_tile is None:
        row_tile = 512 if vmem_cap >= 96 * 1024 * 1024 else 256
    row_tile = max(16, _round_up(min(row_tile, _round_up(n, 16)), 16))

    def _vmem_req(rt):
        req = 2 * rt * know_num * 4                        # x double buffer (f32)
        req += know_num * hidden * 2 + hidden * 4          # w1 (bf16) + b1 (f32)
        req += rt * hidden * 6                             # layer-1 f32+bf16 temps
        if single_col:
            req += hidden * exp_num * 2 + exp_num * 4      # w2 + b2, single-buffered
            req += 2 * rt * exp_num * out_bytes            # out double buffer
            req += rt * exp_num * 4                        # layer-2 f32 temp
        else:
            req += 2 * (hidden * col_tile * 2 + col_tile * 4)   # w2/b2 tiles (x2)
            req += 2 * rt * col_tile * out_bytes
            req += rt * hidden * 2                         # h scratch
            req += rt * col_tile * 4
        return req

    while row_tile > 16 and _vmem_req(row_tile) > budget:
        row_tile = max(16, _round_up(row_tile // 2, 16))

    vmem_limit = int(min(max(_vmem_req(row_tile) + 16 * 1024 * 1024,
                             32 * 1024 * 1024),
                         0.75 * vmem_cap))

    # ---- operands (only the small one-time weights are cast/padded) --------
    xp = x.astype(jnp.float32)
    w1b = w1.astype(jnp.bfloat16)
    b1r = b1.astype(jnp.float32).reshape(1, hidden)
    grid_i = pl.cdiv(n, row_tile)

    if single_col:
        w2b = w2.astype(jnp.bfloat16)
        b2r = b2.astype(jnp.float32).reshape(1, exp_num)
        flops = 2 * n * (know_num * hidden + hidden * exp_num)
        transcendentals = n * (hidden + exp_num)
        bytes_accessed = (xp.size * 4 + w1b.size * 2 + w2b.size * 2
                          + b1r.size * 4 + b2r.size * 4
                          + n * exp_num * out_bytes)
        out = pl.pallas_call(
            _gnn_fused_kernel,
            out_shape=jax.ShapeDtypeStruct((n, exp_num), out_dtype),
            grid=(grid_i,),
            in_specs=[
                # streamed rows: unpadded f32, full-extent last dim
                pl.BlockSpec((row_tile, know_num), lambda i: (i, 0)),
                # resident weights/biases: loaded from HBM exactly once
                pl.BlockSpec((know_num, hidden), lambda i: (0, 0),
                             pipeline_mode=pl.Buffered(1)),
                pl.BlockSpec((1, hidden), lambda i: (0, 0),
                             pipeline_mode=pl.Buffered(1)),
                pl.BlockSpec((hidden, exp_num), lambda i: (0, 0),
                             pipeline_mode=pl.Buffered(1)),
                pl.BlockSpec((1, exp_num), lambda i: (0, 0),
                             pipeline_mode=pl.Buffered(1)),
            ],
            out_specs=pl.BlockSpec((row_tile, exp_num), lambda i: (i, 0)),
            compiler_params=pltpu.CompilerParams(
                dimension_semantics=("parallel",),
                vmem_limit_bytes=vmem_limit),
            cost_estimate=pl.CostEstimate(flops=flops,
                                          transcendentals=transcendentals,
                                          bytes_accessed=bytes_accessed),
        )(xp, w1b, b1r, w2b, b2r)
        return out                       # exact (n, exp_num): no post-call slice

    # -------- fallback: column-tiled second layer ----------------------------
    e_pad = _round_up(exp_num, col_tile)
    w2b = jnp.pad(w2.astype(jnp.bfloat16), ((0, 0), (0, e_pad - exp_num)))
    b2r = jnp.pad(b2.astype(jnp.float32).reshape(1, exp_num),
                  ((0, 0), (0, e_pad - exp_num)))
    flops = 2 * n * (know_num * hidden + hidden * e_pad)
    transcendentals = n * (hidden + e_pad)
    bytes_accessed = (xp.size * 4 + w1b.size * 2 + b1r.size * 4
                      + grid_i * (w2b.size * 2 + b2r.size * 4)   # re-streamed per row block
                      + n * e_pad * out_bytes)
    out = pl.pallas_call(
        _gnn_coltiled_kernel,
        out_shape=jax.ShapeDtypeStruct((n, e_pad), out_dtype),
        grid=(grid_i, e_pad // col_tile),
        in_specs=[
            pl.BlockSpec((row_tile, know_num), lambda i, j: (i, 0)),
            pl.BlockSpec((know_num, hidden), lambda i, j: (0, 0),
                         pipeline_mode=pl.Buffered(1)),
            pl.BlockSpec((1, hidden), lambda i, j: (0, 0),
                         pipeline_mode=pl.Buffered(1)),
            pl.BlockSpec((hidden, col_tile), lambda i, j: (0, j)),
            pl.BlockSpec((1, col_tile), lambda i, j: (0, j)),
        ],
        out_specs=pl.BlockSpec((row_tile, col_tile), lambda i, j: (i, j)),
        scratch_shapes=[pltpu.VMEM((row_tile, hidden), jnp.bfloat16)],
        compiler_params=pltpu.CompilerParams(
            # j must stay 'arbitrary': the h cache relies on sequential j.
            dimension_semantics=("parallel", "arbitrary"),
            vmem_limit_bytes=vmem_limit),
        cost_estimate=pl.CostEstimate(flops=flops,
                                      transcendentals=transcendentals,
                                      bytes_accessed=bytes_accessed),
    )(xp, w1b, b1r, w2b, b2r)
    return out[:, :exp_num]


def init_params(key, know_num, exp_num, hidden=256):
    """Deterministic init mimicking PyTorch nn.Linear: U(-1/sqrt(fan_in), +)."""
    k1, k2, k3, k4 = jax.random.split(key, 4)
    bound1 = 1.0 / jnp.sqrt(know_num)
    bound2 = 1.0 / jnp.sqrt(hidden)
    w1 = jax.random.uniform(k1, (know_num, hidden), jnp.float32, -bound1, bound1)
    b1 = jax.random.uniform(k2, (hidden,), jnp.float32, -bound1, bound1)
    w2 = jax.random.uniform(k3, (hidden, exp_num), jnp.float32, -bound2, bound2)
    b2 = jax.random.uniform(k4, (exp_num,), jnp.float32, -bound2, bound2)
    return w1, b1, w2, b2


if __name__ == "__main__":
    # Small shapes consistent with the module forward: [batch, know_num] rows.
    # batch is not a multiple of the row tile (exercises the partial row block),
    # know_num / exp_num are not multiples of 128 (exercise full-extent blocks).
    batch = 300
    know_num = 50
    exp_num = 200

    key = jax.random.PRNGKey(0)
    kx, kp = jax.random.split(key)
    x = jax.random.normal(kx, (batch, know_num), dtype=jnp.float32)
    w1, b1, w2, b2 = init_params(kp, know_num, exp_num)

    # Pure-JAX f32 reference (eval-mode dropout == identity). Kernel matmuls use
    # bf16 operands with f32 accumulation + approx reciprocal -> loose tolerance.
    h_ref = jax.nn.sigmoid(x @ w1 + b1[None, :])
    ref = jax.nn.sigmoid(h_ref @ w2 + b2[None, :])

    # Path A: default -- single column block, weights resident in VMEM.
    out_a = jax.block_until_ready(exer_know_gnn_forward(x, w1, b1, w2, b2))
    assert out_a.shape == (batch, exp_num)
    err_a = float(jnp.max(jnp.abs(out_a - ref)))
    assert jnp.allclose(out_a, ref, atol=2e-2, rtol=2e-2), err_a

    # Path B: forced column tiling (fallback used for very large exp_num);
    # exercises the cached-hidden-activation 2-D grid.
    out_b = jax.block_until_ready(
        exer_know_gnn_forward(x, w1, b1, w2, b2, col_tile=128))
    assert out_b.shape == (batch, exp_num)
    err_b = float(jnp.max(jnp.abs(out_b - ref)))
    assert jnp.allclose(out_b, ref, atol=2e-2, rtol=2e-2), err_b

    print("KERNEL_OK")
</pallas_src>

<mosaic_0001>
module attributes {stable_mosaic.version = 11 : i64} {
  func.func @_gnn_fused_kernel(%arg0: i32, %arg1: memref<256x50xf32, #tpu.memory_space<vmem>>, %arg2: memref<50x256xbf16, #tpu.memory_space<vmem>>, %arg3: memref<1x256xf32, #tpu.memory_space<vmem>>, %arg4: memref<256x200xbf16, #tpu.memory_space<vmem>>, %arg5: memref<1x200xf32, #tpu.memory_space<vmem>>, %arg6: memref<256x200xf32, #tpu.memory_space<vmem>>) attributes {dimension_semantics = [#tpu.dimension_semantics<parallel>], iteration_bounds = array<i64: 2>, scalar_prefetch = 0 : i64, scratch_operands = 0 : i64, tpu.core_type = #tpu.core_type<tc>, window_params = [{transform_indices = @transform_0, window_bounds = array<i64: 256, 50>}, {pipeline_mode = #tpu.pipeline_mode<synchronous>, transform_indices = @transform_1, window_bounds = array<i64: 50, 256>}, {pipeline_mode = #tpu.pipeline_mode<synchronous>, transform_indices = @transform_2, window_bounds = array<i64: 1, 256>}, {pipeline_mode = #tpu.pipeline_mode<synchronous>, transform_indices = @transform_3, window_bounds = array<i64: 256, 200>}, {pipeline_mode = #tpu.pipeline_mode<synchronous>, transform_indices = @transform_4, window_bounds = array<i64: 1, 200>}, {transform_indices = @transform_5, window_bounds = array<i64: 256, 200>}]} {
    %c0 = arith.constant 0 : index
    %c0_0 = arith.constant 0 : index
    %0 = vector.load %arg1[%c0, %c0_0] : memref<256x50xf32, #tpu.memory_space<vmem>>, vector<256x50xf32>
    %1 = arith.truncf %0 : vector<256x50xf32> to vector<256x50xbf16>
    %c0_1 = arith.constant 0 : index
    %c0_2 = arith.constant 0 : index
    %2 = vector.load %arg2[%c0_1, %c0_2] : memref<50x256xbf16, #tpu.memory_space<vmem>>, vector<50x256xbf16>
    %cst = arith.constant dense<0.000000e+00> : vector<256x256xf32>
    %3 = tpu.matmul %1, %2, %cst {dimension_numbers = #tpu.dot_dimension_numbers<[1], [0], [0], [1], [0, 0, 1, 1], [], []>} : vector<256x50xbf16>, vector<50x256xbf16>, vector<256x256xf32> -> vector<256x256xf32>
    %c0_3 = arith.constant 0 : index
    %c0_4 = arith.constant 0 : index
    %4 = vector.load %arg3[%c0_3, %c0_4] : memref<1x256xf32, #tpu.memory_space<vmem>>, vector<1x256xf32>
    %5 = vector.broadcast %4 : vector<1x256xf32> to vector<256x256xf32>
    %6 = arith.addf %3, %5 : vector<256x256xf32>
    %cst_5 = arith.constant 0.000000e+00 : f32
    %7 = vector.broadcast %cst_5 : f32 to vector<256x256xf32>
    %8 = arith.subf %7, %6 : vector<256x256xf32>
    %9 = math.exp %8 : vector<256x256xf32>
    %cst_6 = arith.constant 1.000000e+00 : f32
    %10 = vector.broadcast %cst_6 : f32 to vector<256x256xf32>
    %11 = arith.addf %10, %9 : vector<256x256xf32>
    %12 = tpu.reciprocal %11 {approx = true} : vector<256x256xf32> -> vector<256x256xf32>
    %13 = arith.truncf %12 : vector<256x256xf32> to vector<256x256xbf16>
    %c0_7 = arith.constant 0 : index
    %c0_8 = arith.constant 0 : index
    %14 = vector.load %arg4[%c0_7, %c0_8] : memref<256x200xbf16, #tpu.memory_space<vmem>>, vector<256x200xbf16>
    %cst_9 = arith.constant dense<0.000000e+00> : vector<256x200xf32>
    %15 = tpu.matmul %13, %14, %cst_9 {dimension_numbers = #tpu.dot_dimension_numbers<[1], [0], [0], [1], [0, 0, 1, 1], [], []>} : vector<256x256xbf16>, vector<256x200xbf16>, vector<256x200xf32> -> vector<256x200xf32>
    %c0_10 = arith.constant 0 : index
    %c0_11 = arith.constant 0 : index
    %16 = vector.load %arg5[%c0_10, %c0_11] : memref<1x200xf32, #tpu.memory_space<vmem>>, vector<1x200xf32>
    %17 = vector.broadcast %16 : vector<1x200xf32> to vector<256x200xf32>
    %18 = arith.addf %15, %17 : vector<256x200xf32>
    %cst_12 = arith.constant 0.000000e+00 : f32
    %19 = vector.broadcast %cst_12 : f32 to vector<256x200xf32>
    %20 = arith.subf %19, %18 : vector<256x200xf32>
    %21 = math.exp %20 : vector<256x200xf32>
    %cst_13 = arith.constant 1.000000e+00 : f32
    %22 = vector.broadcast %cst_13 : f32 to vector<256x200xf32>
    %23 = arith.addf %22, %21 : vector<256x200xf32>
    %24 = tpu.reciprocal %23 {approx = true} : vector<256x200xf32> -> vector<256x200xf32>
    %c0_14 = arith.constant 0 : index
    %c0_15 = arith.constant 0 : index
    %25 = vector.load %arg6[%c0_14, %c0_15] : memref<256x200xf32, #tpu.memory_space<vmem>>, vector<256x200xf32>
    tpu.vector_store %arg6[%c0_14, %c0_15], %24 {strides = array<i32>} : memref<256x200xf32, #tpu.memory_space<vmem>>, vector<256x200xf32>,
    return
  }
  func.func @transform_0(%arg0: i32) -> (i32, i32) {
    %c0_i32 = arith.constant 0 : i32
    %c0_i32_0 = arith.constant 0 : i32
    return %arg0, %c0_i32 : i32, i32
  }
  func.func @transform_1(%arg0: i32) -> (i32, i32) {
    %c0_i32 = arith.constant 0 : i32
    %c0_i32_0 = arith.constant 0 : i32
    %c0_i32_1 = arith.constant 0 : i32
    return %c0_i32, %c0_i32_0 : i32, i32
  }
  func.func @transform_2(%arg0: i32) -> (i32, i32) {
    %c0_i32 = arith.constant 0 : i32
    %c0_i32_0 = arith.constant 0 : i32
    %c0_i32_1 = arith.constant 0 : i32
    return %c0_i32, %c0_i32_0 : i32, i32
  }
  func.func @transform_3(%arg0: i32) -> (i32, i32) {
    %c0_i32 = arith.constant 0 : i32
    %c0_i32_0 = arith.constant 0 : i32
    %c0_i32_1 = arith.constant 0 : i32
    return %c0_i32, %c0_i32_0 : i32, i32
  }
  func.func @transform_4(%arg0: i32) -> (i32, i32) {
    %c0_i32 = arith.constant 0 : i32
    %c0_i32_0 = arith.constant 0 : i32
    %c0_i32_1 = arith.constant 0 : i32
    return %c0_i32, %c0_i32_0 : i32, i32
  }
  func.func @transform_5(%arg0: i32) -> (i32, i32) {
    %c0_i32 = arith.constant 0 : i32
    %c0_i32_0 = arith.constant 0 : i32
    return %arg0, %c0_i32 : i32, i32
  }
}

</mosaic_0001>

<bundles_post_ra>
// kernel: tpu_custom_call.1
= control target key start
LH: loop header
LB: loop body
LE: loop exit
PB: predicated region body
PF: predicated region fallthrough
CT: control target
= control target key end

     0   :  { %s2916_s18 = smov 0   ;;  %s2918_s19 = smov 0   ;;  %s3599_s0 = inlined_call_operand.vmem [shape: f32[300,50], index: 0, kind: input, shape index: {}]   ;;  %s3600_s1 = inlined_call_operand.vmem [shape: bf16[50,256], index: 1, kind: input, shape index: {}]   ;;  %s3601_s2 = inlined_call_operand.vmem [shape: f32[1,256], index: 2, kind: input, shape index: {}]   ;;  %s3602_s3 = inlined_call_operand.vmem [shape: bf16[256,200], index: 3, kind: input, shape index: {}]   ;;  %s3603_s4 = inlined_call_operand.vmem [shape: f32[1,200], index: 4, kind: input, shape index: {}]   ;;  %s3604_s5 = inlined_call_operand.vmem [shape: f32[300,200], index: 5, kind: output, shape index: {}]  }
   0x1   :  { %s2920_s20 = smov 0  }
   0x2 LB: > { %s2929_s21 = sadd.s32 4294967295, %s2851_s20   ;;  %s2931_s22 = sadd.s32 1, %s2851_s20   ;;  %s2851_s20 = sphi %s2920_s20, %s3613_s20   ;;  %s2847_s19 = sphi %s2918_s19, %s3612_s19   ;;  %s2843_s18 = sphi %s2916_s18, %s3611_s18  }
   0x3   : > { %s129_s23 = ssub.s32 %s2851_s20, %s2931_s22  ;;  %s132_s24 = sadd.s32 1, %s2847_s19 }
   0x4   : > { %p130_p0 = scmp.eq.s32.totalorder %s129_s23, 0  ;;  %p142_p1 = scmp.ne.s32.totalorder %s2847_s19, %s2843_s18 }
   0x5   : > { %p143_p2 = scmp.eq.s32.totalorder %s2929_s21, 1  ;;  %p2020_p3 = scmp.ge.s32.totalorder %s2851_s20, 1 }
   0x6   : > { %s2939_s25 = scalar_select %p130_p0, %s2847_s19, %s132_s24  }
   0x7   : > { %p2941_p4 = por %p143_p2, %p142_p1  ;;  %p196_p5 = scmp.lt.s32.totalorder %s2851_s20, 3 }
   0x9   : > { %p197_p6 = pnand %p2020_p3, %p196_p5 }
   0xa   : > { %v2226_v0 = vld [vmem:[%s3600_s1 + $0x4] ss:$8 sps:$4 sm:$0xff] (!%p197_p6)   ;;  %v2228_v1 = vld [vmem:[%s3600_s1] ss:$8 sps:$4 sm:$0xff] (!%p197_p6)   ;;  %v2885_v2 = vmov (!%p197_p6), 0   ;;  %s2953_s6 = sshll.u32 (!%p197_p6), %s2929_s21, 5 }
   0xb   : > { %200 = sbr.rel (%p197_p6) target bundleno = 720 (0x2d0), region = 40  ;;  %438 = vmatprep.mubr.bf16.mxu0 (!%p197_p6), %v2885_v2  ;;  %406 = vmatprep.subr.bf16.mxu0 (!%p197_p6), %v2226_v0  ;;  %v2229_v3 = vld [vmem:[%s3600_s1 + $0x14] ss:$8 sps:$4 sm:$0xff] (!%p197_p6)   ;;  %p232_p7 = scmp.lt.s32.totalorder (!%p197_p6), %s2953_s6, 37  ;;  %v2231_v4 = vld [vmem:[%s3600_s1 + $0x10] ss:$8 sps:$4 sm:$0xff] (!%p197_p6)  }
   0xc   : > { %407 = vmatpush1.bf16.msra.mxu0 (!%p197_p6), %v2228_v1  ;;  %v2232_v5 = vld [vmem:[%s3600_s1 + $0x24] ss:$8 sps:$4 sm:$0xff] (!%p197_p6)   ;;  %v302_v6 = vld [vmem:[%s3600_s1 + $0x30] sm:$0x11] (!%p197_p6)  ;;  %v2234_v7 = vld [vmem:[%s3600_s1 + $0x20] ss:$8 sps:$4 sm:$0xff] (!%p197_p6)  }
   0xd   : > { %408 = vmatprep.subr.bf16.mxu0 (!%p197_p6), %v2229_v3  ;;  %v2031_v8 = vcombine.high (!%p197_p6), %v302_v6, %v302_v6  ;;  %v2030_v9 = vcombine.low (!%p197_p6), %v302_v6, %v302_v6  ;;  %vm399_vm0 = vcmask (!%p197_p6), 1040384   ;;  %vm350_vm1 = vcmask (!%p197_p6), 408576   ;;  %v2237_v15 = vld [vmem:[%s3602_s3] ss:$8 sps:$4 sm:$0xff] (!%p197_p6)   ;;  %v2239_v17 = vld [vmem:[%s3602_s3 + $0x4] ss:$8 sps:$4 sm:$0xff] (!%p197_p6)  }
   0xe   : > { %v2242_v18 = vld [vmem:[%s3602_s3 + $0x14] ss:$8 sps:$4 sm:$0xff] (!%p197_p6)   ;;  %2105 = vmatprep.subr.bf16.mxu1 (!%p197_p6), %v2239_v17  ;;  %v2240_v20 = vld [vmem:[%s3602_s3 + $0x10] ss:$8 sps:$4 sm:$0xff] (!%p197_p6)   ;;  %v2245_v21 = vld [vmem:[%s3602_s3 + $0x24] ss:$8 sps:$4 sm:$0xff] (!%p197_p6)  }
   0xf   : > { %v401_v12 = vsel (!%p197_p6), %vm399_vm0, %v2030_v9, 0  ;;  %2121 = vmatpush1.bf16.msra.mxu1 (!%p197_p6), %v2237_v15  ;;  %v2243_v24 = vld [vmem:[%s3602_s3 + $0x20] ss:$8 sps:$4 sm:$0xff] (!%p197_p6)   ;;  %v2248_v25 = vld [vmem:[%s3602_s3 + $0x34] ss:$8 sps:$4 sm:$0xff] (!%p197_p6)   ;;  %s224_s24 = sand.u32 (!%p197_p6), 1, %s2843_s18  }
  0x10   : > { %409 = vmatpush1.bf16.msra.mxu0 (!%p197_p6), %v2231_v4  ;;  %2106 = vmatprep.subr.bf16.mxu1 (!%p197_p6), %v2242_v18  ;;  %v2246_v27 = vld [vmem:[%s3602_s3 + $0x30] ss:$8 sps:$4 sm:$0xff] (!%p197_p6)   ;;  %v2251_v28 = vld [vmem:[%s3602_s3 + $0x44] ss:$8 sps:$4 sm:$0xff] (!%p197_p6)   ;;  %v2249_v31 = vld [vmem:[%s3602_s3 + $0x40] ss:$8 sps:$4 sm:$0xff] (!%p197_p6)  }
  0x11   : > { %410 = vmatprep.subr.bf16.mxu0 (!%p197_p6), %v2232_v5  ;;  %v2254_v32 = vld [vmem:[%s3602_s3 + $0x54] ss:$8 sps:$4 sm:$0xff] (!%p197_p6)   ;;  %v2252_v34 = vld [vmem:[%s3602_s3 + $0x50] ss:$8 sps:$4 sm:$0xff] (!%p197_p6)   ;;  %v2257_v35 = vld [vmem:[%s3602_s3 + $0x64] ss:$8 sps:$4 sm:$0xff] (!%p197_p6)  }
  0x12   : > { %s233_s15 = scalar_select %p232_p7, %s2953_s6, 37  ;;  %v2255_v38 = vld [vmem:[%s3602_s3 + $0x60] ss:$8 sps:$4 sm:$0xff]   ;;  %v2260_v60 = vld [vmem:[%s3602_s3 + $0x74] ss:$8 sps:$4 sm:$0xff]   ;;  %vm1669_vm2 = vcmask 588800  }
  0x13   : > { %2122 = vmatpush1.bf16.msra.mxu1 %v2240_v20  ;;  %v2258_v61 = vld [vmem:[%s3602_s3 + $0x70] ss:$8 sps:$4 sm:$0xff]   ;;  %v2263_v63 = vld [vmem:[%s3602_s3 + $0x84] ss:$8 sps:$4 sm:$0xff]   ;;  %v2261_v0 = vld [vmem:[%s3602_s3 + $0x80] ss:$8 sps:$4 sm:$0xff]  }
  0x14   : > { %s2023_s20 = sshll.u32 %s233_s15, 3  ;;  %411 = vmatpush1.bf16.msra.mxu0 %v2234_v7  ;;  %2107 = vmatprep.subr.bf16.mxu1 %v2245_v21  ;;  %v2266_v4 = vld [vmem:[%s3602_s3 + $0x94] ss:$8 sps:$4 sm:$0xff]   ;;  %v2264_v5 = vld [vmem:[%s3602_s3 + $0x90] ss:$8 sps:$4 sm:$0xff]   ;;  %s2021_s28 = sshll.u32 %s224_s24, 9 }
  0x15   : > { %s2975_s27 = scalar_lea.vmem %s3599_s0, %s2023_s20  ;;  %2032 = vmatprep.subr.msk.bf16.mxu0 %vm399_vm0, %v2031_v8  ;;  %v2269_v7 = vld [vmem:[%s3602_s3 + $0xa4] ss:$8 sps:$4 sm:$0xff]   ;;  %v2267_v8 = vld [vmem:[%s3602_s3 + $0xa0] ss:$8 sps:$4 sm:$0xff]   ;;  %s3243_s18 = scalar_lea.vmem [#allocation2], %s2021_s28  }
  0x16   : > { %v248_v10 = vld [vmem:[%s2975_s27] sm:$0xff]  ;;  %v249_v11 = vld [vmem:[%s2975_s27 + $0x8] sm:$0xff]  ;;  %v250_v14 = vld [vmem:[%s2975_s27 + $0x10] sm:$0xff]  ;;  %s1741_s29 = ssub.s32 (%p2941_p4), 38, %s2953_s6  ;;  %s2102_s30 = sshll.u32 (%p2941_p4), %s2929_s21, 9 }
  0x17   : > { %v280_v13 = vpack.c.bf16 %v249_v11, %v248_v10  ;;  %v251_v16 = vld [vmem:[%s2975_s27 + $0x18] sm:$0xff]  ;;  %v252_v22 = vld [vmem:[%s2975_s27 + $0x20] sm:$0xff]  ;;  %v253_v23 = vld [vmem:[%s2975_s27 + $0x28] sm:$0xff]  ;;  %2123 = vmatpush1.bf16.msra.mxu1 %v2243_v24  ;;  %p1742_p8 = scmp.lt.s32.totalorder (%p2941_p4), %s1741_s29, 32  ;;  %s3396_s9 = scalar_lea.vmem (%p2941_p4), %s3604_s5, %s2102_s30  }
  0x18   : > { %413 = vmatpush1.bf16.msra.mxu0 %v401_v12  ;;  %v281_v19 = vpack.c.bf16 %v251_v16, %v250_v14  ;;  %v282_v26 = vpack.c.bf16 %v253_v23, %v252_v22  ;;  %2108 = vmatprep.subr.bf16.mxu1 %v2248_v25  ;;  %v254_v29 = vld [vmem:[%s2975_s27 + $0x30] sm:$0xff]  ;;  %v255_v30 = vld [vmem:[%s2975_s27 + $0x38] sm:$0xff]  ;;  %v256_v36 = vld [vmem:[%s2975_s27 + $0x40] sm:$0xff] }
  0x19   : > { %1155 = vmatprep.subr.bf16.mxu0 %v2239_v17  ;;  %v283_v33 = vpack.c.bf16 %v255_v30, %v254_v29  ;;  %v257_v37 = vld [vmem:[%s2975_s27 + $0x48] sm:$0xff]  ;;  %v258_v40 = vld [vmem:[%s2975_s27 + $0x50] sm:$0xff]  ;;  %v259_v41 = vld [vmem:[%s2975_s27 + $0x58] sm:$0xff] }
  0x1a   : > { %v284_v39 = vpack.c.bf16 %v257_v37, %v256_v36  ;;  %v285_v42 = vpack.c.bf16 %v259_v41, %v258_v40  ;;  %v260_v43 = vld [vmem:[%s2975_s27 + $0x60] sm:$0xff]  ;;  %v261_v44 = vld [vmem:[%s2975_s27 + $0x68] sm:$0xff]  ;;  %v262_v46 = vld [vmem:[%s2975_s27 + $0x70] sm:$0xff] }
  0x1b   : > { %2033 = vmatmul.mubr.msk.bf16.vlgmr.msra.gmra.mrb[0].mxu0 %vm350_vm1, %v280_v13  ;;  %2124 = vmatpush1.bf16.msra.mxu1 %v2246_v27  ;;  %v286_v45 = vpack.c.bf16 %v261_v44, %v260_v43  ;;  %v263_v47 = vld [vmem:[%s2975_s27 + $0x78] sm:$0xff]  ;;  %v264_v49 = vld [vmem:[%s2975_s27 + $0x80] sm:$0xff]  ;;  %v265_v50 = vld [vmem:[%s2975_s27 + $0x88] sm:$0xff] }
  0x1c   : > { %448 = vmatprep.mubr.bf16.mxu0 %v2885_v2  ;;  %1156 = vmatpush1.bf16.msra.mxu0 %v2237_v15  ;;  %v287_v48 = vpack.c.bf16 %v263_v47, %v262_v46  ;;  %v288_v51 = vpack.c.bf16 %v265_v50, %v264_v49  ;;  %v266_v52 = vld [vmem:[%s2975_s27 + $0x90] sm:$0xff]  ;;  %v267_v53 = vld [vmem:[%s2975_s27 + $0x98] sm:$0xff]  ;;  %v268_v55 = vld [vmem:[%s2975_s27 + $0xa0] sm:$0xff] }
  0x1d   : > { %1157 = vmatprep.subr.bf16.mxu0 %v2242_v18  ;;  %2109 = vmatprep.subr.bf16.mxu1 %v2251_v28  ;;  %v289_v54 = vpack.c.bf16 %v267_v53, %v266_v52  ;;  %v269_v56 = vld [vmem:[%s2975_s27 + $0xa8] sm:$0xff]  ;;  %v270_v58 = vld [vmem:[%s2975_s27 + $0xb0] sm:$0xff]  ;;  %v271_v59 = vld [vmem:[%s2975_s27 + $0xb8] sm:$0xff] }
  0x1e   : > { %v290_v57 = vpack.c.bf16 %v269_v56, %v268_v55  ;;  %v291_v62 = vpack.c.bf16 %v271_v59, %v270_v58  ;;  %v272_v1 = vld [vmem:[%s2975_s27 + $0xc0] sm:$0xff]  ;;  %v273_v3 = vld [vmem:[%s2975_s27 + $0xc8] sm:$0xff]  ;;  %v274_v9 = vld [vmem:[%s2975_s27 + $0xd0] sm:$0xff] }
  0x1f   : > { %2125 = vmatpush1.bf16.msra.mxu1 %v2249_v31  ;;  %v292_v6 = vpack.c.bf16 %v273_v3, %v272_v1  ;;  %v275_v10 = vld [vmem:[%s2975_s27 + $0xd8] sm:$0xff]  ;;  %v2275_v14 = vld [vmem:[%s3602_s3 + $0xc4] ss:$8 sps:$4 sm:$0xff]   ;;  %v2273_v15 = vld [vmem:[%s3602_s3 + $0xc0] ss:$8 sps:$4 sm:$0xff]  }
  0x20   : > { %1158 = vmatpush1.bf16.msra.mxu0 %v2240_v20  ;;  %2110 = vmatprep.subr.bf16.mxu1 %v2254_v32  ;;  %v2272_v11 = vld [vmem:[%s3602_s3 + $0xb4] ss:$8 sps:$4 sm:$0xff]   ;;  %v293_v12 = vpack.c.bf16 %v275_v10, %v274_v9  ;;  %v2270_v13 = vld [vmem:[%s3602_s3 + $0xb0] ss:$8 sps:$4 sm:$0xff]   ;;  %v276_v16 = vld [vmem:[%s2975_s27 + $0xe0] sm:$0xff] }
  0x21   : > { %1159 = vmatprep.subr.bf16.mxu0 %v2245_v21  ;;  %v277_v17 = vld [vmem:[%s2975_s27 + $0xe8] sm:$0xff]  ;;  %v2278_v18 = vld [vmem:[%s3602_s3 + $0xd4] ss:$8 sps:$4 sm:$0xff]   ;;  %v2276_v20 = vld [vmem:[%s3602_s3 + $0xd0] ss:$8 sps:$4 sm:$0xff]  }
  0x22   : > { %v2281_v21 = vld [vmem:[%s3602_s3 + $0xe4] ss:$8 sps:$4 sm:$0xff]   ;;  %v2279_v22 = vld [vmem:[%s3602_s3 + $0xe0] ss:$8 sps:$4 sm:$0xff]   ;;  %v278_v23 = vld [vmem:[%s2975_s27 + $0xf0] sm:$0xff] }
  0x23   : > { %2034 = vmatmul.mubr.msk.bf16.gmra.mrb[4].mxu0 %vm350_vm1, %v281_v19  ;;  %2126 = vmatpush1.bf16.msra.mxu1 %v2252_v34  ;;  %v294_v19 = vpack.c.bf16 %v277_v17, %v276_v16  ;;  %v303_v30 = vld [vmem:[%s3601_s2] sm:$0x3] }
  0x24   : > { %458 = vmatprep.mubr.bf16.mxu0 %v2885_v2  ;;  %1160 = vmatpush1.bf16.msra.mxu0 %v2243_v24  ;;  %v279_v24 = vld [vmem:[%s2975_s27 + $0xf8] sm:$0xff] }
  0x25   : > { %1161 = vmatprep.subr.bf16.mxu0 %v2248_v25  ;;  %2111 = vmatprep.subr.bf16.mxu1 %v2257_v35  ;;  %v295_v25 = vpack.c.bf16 %v279_v24, %v278_v23 }
  0x27   : > { %2127 = vmatpush1.bf16.msra.mxu1 %v2255_v38 }
  0x28   : > { %1162 = vmatpush1.bf16.msra.mxu0 %v2246_v27  ;;  %2112 = vmatprep.subr.bf16.mxu1 %v2260_v60  ;;  %v2282_v27 = vld [vmem:[%s3602_s3 + $0xf0] ss:$8 sps:$4 sm:$0xff]  }
  0x29   : > { %1163 = vmatprep.subr.bf16.mxu0 %v2251_v28 }
  0x2b   : > { %2035 = vmatmul.mubr.msk.bf16.gmra.mrb[8].mxu0 %vm350_vm1, %v282_v26  ;;  %2128 = vmatpush1.bf16.msra.mxu1 %v2258_v61  ;;  %v2284_v26 = vld [vmem:[%s3602_s3 + $0xf4] ss:$8 sps:$4 sm:$0xff]  }
  0x2c   : > { %468 = vmatprep.mubr.bf16.mxu0 %v2885_v2  ;;  %1164 = vmatpush1.bf16.msra.mxu0 %v2249_v31 }
  0x2d   : > { %1165 = vmatprep.subr.bf16.mxu0 %v2254_v32  ;;  %2113 = vmatprep.subr.bf16.mxu1 %v2263_v63 }
  0x2f   : > { %2129 = vmatpush1.bf16.msra.mxu1 %v2261_v0 }
  0x30   : > { %1166 = vmatpush1.bf16.msra.mxu0 %v2252_v34  ;;  %2114 = vmatprep.subr.bf16.mxu1 %v2266_v4 }
  0x31   : > { %1167 = vmatprep.subr.bf16.mxu0 %v2257_v35 }
  0x33   : > { %2036 = vmatmul.mubr.msk.bf16.gmra.mrb[12].mxu0 %vm350_vm1, %v283_v33  ;;  %2130 = vmatpush1.bf16.msra.mxu1 %v2264_v5 }
  0x34   : > { %478 = vmatprep.mubr.bf16.mxu0 %v2885_v2  ;;  %1168 = vmatpush1.bf16.msra.mxu0 %v2255_v38 }
  0x35   : > { %1169 = vmatprep.subr.bf16.mxu0 %v2260_v60  ;;  %2115 = vmatprep.subr.bf16.mxu1 %v2269_v7 }
  0x37   : > { %2131 = vmatpush1.bf16.msra.mxu1 %v2267_v8 }
  0x38   : > { %1170 = vmatpush1.bf16.msra.mxu0 %v2258_v61  ;;  %2116 = vmatprep.subr.bf16.mxu1 %v2272_v11 }
  0x39   : > { %1171 = vmatprep.subr.bf16.mxu0 %v2263_v63 }
  0x3b   : > { %2037 = vmatmul.mubr.msk.bf16.gmra.mrb[16].mxu0 %vm350_vm1, %v284_v39  ;;  %2132 = vmatpush1.bf16.msra.mxu1 %v2270_v13 }
  0x3c   : > { %488 = vmatprep.mubr.bf16.mxu0 %v2885_v2  ;;  %1172 = vmatpush1.bf16.msra.mxu0 %v2261_v0 }
  0x3d   : > { %1173 = vmatprep.subr.bf16.mxu0 %v2266_v4  ;;  %2117 = vmatprep.subr.bf16.mxu1 %v2275_v14 }
  0x3f   : > { %2133 = vmatpush1.bf16.msra.mxu1 %v2273_v15 }
  0x40   : > { %1174 = vmatpush1.bf16.msra.mxu0 %v2264_v5  ;;  %2118 = vmatprep.subr.bf16.mxu1 %v2278_v18 }
  0x41   : > { %1175 = vmatprep.subr.bf16.mxu0 %v2269_v7 }
  0x43   : > { %2038 = vmatmul.mubr.msk.bf16.gmra.mrb[20].mxu0 %vm350_vm1, %v285_v42  ;;  %2134 = vmatpush1.bf16.msra.mxu1 %v2276_v20 }
  0x44   : > { %498 = vmatprep.mubr.bf16.mxu0 %v2885_v2  ;;  %1176 = vmatpush1.bf16.msra.mxu0 %v2267_v8 }
  0x45   : > { %1177 = vmatprep.subr.bf16.mxu0 %v2272_v11  ;;  %2119 = vmatprep.subr.bf16.mxu1 %v2281_v21 }
  0x47   : > { %2135 = vmatpush1.bf16.msra.mxu1 %v2279_v22 }
  0x48   : > { %1178 = vmatpush1.bf16.msra.mxu0 %v2270_v13  ;;  %2120 = vmatprep.subr.bf16.mxu1 %v2284_v26 }
  0x49   : > { %1179 = vmatprep.subr.bf16.mxu0 %v2275_v14 }
  0x4b   : > { %2039 = vmatmul.mubr.msk.bf16.gmra.mrb[24].mxu0 %vm350_vm1, %v286_v45  ;;  %2136 = vmatpush1.bf16.msra.mxu1 %v2282_v27 }
  0x4c   : > { %508 = vmatprep.mubr.bf16.mxu0 %v2885_v2  ;;  %1180 = vmatpush1.bf16.msra.mxu0 %v2273_v15 }
  0x4d   : > { %1181 = vmatprep.subr.bf16.mxu0 %v2278_v18 }
  0x50   : > { %1182 = vmatpush1.bf16.msra.mxu0 %v2276_v20 }
  0x51   : > { %1183 = vmatprep.subr.bf16.mxu0 %v2281_v21 }
  0x53   : > { %2040 = vmatmul.mubr.msk.bf16.gmra.mrb[28].mxu0 %vm350_vm1, %v287_v48 }
  0x54   : > { %518 = vmatprep.mubr.bf16.mxu0 %v2885_v2  ;;  %1184 = vmatpush1.bf16.msra.mxu0 %v2279_v22 }
  0x55   : > { %1185 = vmatprep.subr.bf16.mxu0 %v2284_v26 }
  0x58   : > { %1186 = vmatpush1.bf16.msra.mxu0 %v2282_v27 }
  0x5b   : > { %2041 = vmatmul.mubr.msk.bf16.gmra.mrb[32].mxu0 %vm350_vm1, %v288_v51 }
  0x5c   : > { %528 = vmatprep.mubr.bf16.mxu0 %v2885_v2 }
  0x63   : > { %2042 = vmatmul.mubr.msk.bf16.gmra.mrb[36].mxu0 %vm350_vm1, %v289_v54 }
  0x64   : > { %538 = vmatprep.mubr.bf16.mxu0 %v2885_v2 }
  0x6b   : > { %2043 = vmatmul.mubr.msk.bf16.gmra.mrb[40].mxu0 %vm350_vm1, %v290_v57 }
  0x6c   : > { %548 = vmatprep.mubr.bf16.mxu0 %v2885_v2 }
  0x73   : > { %2044 = vmatmul.mubr.msk.bf16.gmra.mrb[44].mxu0 %vm350_vm1, %v291_v62 }
  0x74   : > { %558 = vmatprep.mubr.bf16.mxu0 %v2885_v2 }
  0x7b   : > { %2045 = vmatmul.mubr.msk.bf16.gmra.mrb[48].mxu0 %vm350_vm1, %v292_v6 }
  0x7c   : > { %568 = vmatprep.mubr.bf16.mxu0 %v2885_v2 }
  0x83   : > { %2046 = vmatmul.mubr.msk.bf16.gmra.mrb[52].mxu0 %vm350_vm1, %v293_v12 }
  0x84   : > { %578 = vmatprep.mubr.bf16.mxu0 %v2885_v2 }
  0x8b   : > { %2047 = vmatmul.mubr.msk.bf16.gmra.mrb[56].mxu0 %vm350_vm1, %v294_v19 }
  0x8c   : > { %588 = vmatprep.mubr.bf16.mxu0 %v2885_v2  ;;  %v305_v2 = vlaneseq }
  0x8e   : > { %v3136_v28 = vshrl.u32 %v305_v2, 7 }
  0x90   : > { %v307_v29 = vsub.s32 0, %v3136_v28  ;;  %v311_v31 = vsub.s32 1, %v3136_v28 }
  0x92   : > { %v3145_v32 = vrot.slane %v303_v30, %v307_v29  ;;  %v3149_v33 = vrot.slane %v303_v30, %v311_v31 }
  0x93   : > { %2048 = vmatmul.mubr.msk.bf16.gmra.mrb[60].mxu0 %vm350_vm1, %v295_v25 }
  0xee   : > { %v440_v34 = vpop.f32.mrb[0].mxu0 }
  0xef   : > { %v441_v35 = vadd.f32 %v440_v34, %v3145_v32  ;;  %v442_v36 = vpop.f32.mrb[1].mxu0 }
  0xf0   : > { %v443_v37 = vadd.f32 %v442_v36, %v3149_v33  ;;  %v444_v38 = vpop.f32.mrb[2].mxu0 }
  0xf1   : > { %v599_v39 = vsub.f32 0.0, %v441_v35  ;;  %v445_v40 = vadd.f32 %v444_v38, %v3145_v32  ;;  %v446_v41 = vpop.f32.mrb[3].mxu0 }
  0xf2   : > { %v600_v42 = vsub.f32 0.0, %v443_v37  ;;  %v447_v43 = vadd.f32 %v446_v41, %v3149_v33 }
  0xf3   : > { %v663_v44 = vmul.f32 1.442695, %v599_v39  ;;  %v601_v45 = vsub.f32 0.0, %v445_v40 }
  0xf4   : > { %v665_v46 = vmul.f32 1.442695, %v600_v42  ;;  %v602_v47 = vsub.f32 0.0, %v447_v43 }
  0xf5   : > { %2285 = vpow2.f32 %v663_v44  ;;  %v667_v48 = vmul.f32 1.442695, %v601_v45 }
  0xf6   : > { %2287 = vpow2.f32 %v665_v46  ;;  %v669_v49 = vmul.f32 1.442695, %v602_v47  ;;  %v450_v50 = vpop.f32.mrb[4].mxu0 }
  0xf7   : > { %2289 = vpow2.f32 %v667_v48  ;;  %v451_v51 = vadd.f32 %v450_v50, %v3145_v32  ;;  %v452_v52 = vpop.f32.mrb[5].mxu0 }
  0xf8   : > { %2291 = vpow2.f32 %v669_v49  ;;  %v453_v53 = vadd.f32 %v452_v52, %v3149_v33  ;;  %v454_v54 = vpop.f32.mrb[6].mxu0 }
  0xf9   : > { %v603_v55 = vsub.f32 0.0, %v451_v51  ;;  %v455_v56 = vadd.f32 %v454_v54, %v3145_v32  ;;  %v456_v57 = vpop.f32.mrb[7].mxu0 }
  0xfa   : > { %v604_v58 = vsub.f32 0.0, %v453_v53  ;;  %v457_v59 = vadd.f32 %v456_v57, %v3149_v33 }
  0xfb   : > { %v671_v60 = vmul.f32 1.442695, %v603_v55  ;;  %v605_v61 = vsub.f32 0.0, %v455_v56 }
  0xfc   : > { %v673_v62 = vmul.f32 1.442695, %v604_v58  ;;  %v606_v63 = vsub.f32 0.0, %v457_v59 }
  0xfd   : > { %2293 = vpow2.f32 %v671_v60  ;;  %v675_v0 = vmul.f32 1.442695, %v605_v61 }
  0xfe   : > { %2295 = vpow2.f32 %v673_v62  ;;  %v677_v1 = vmul.f32 1.442695, %v606_v63  ;;  %v460_v3 = vpop.f32.mrb[8].mxu0 }
  0xff   : > { %v2286_v4 = vpop.eup %2285  ;;  %2297 = vpow2.f32 %v675_v0  ;;  %v461_v5 = vadd.f32 %v460_v3, %v3145_v32  ;;  %v462_v6 = vpop.f32.mrb[9].mxu0 }
 0x100   : > { %v2288_v7 = vpop.eup %2287  ;;  %v791_v8 = vadd.f32 1.0, %v2286_v4  ;;  %2299 = vpow2.f32 %v677_v1  ;;  %v463_v9 = vadd.f32 %v462_v6, %v3149_v33  ;;  %v464_v10 = vpop.f32.mrb[10].mxu0 }
 0x101   : > { %v2290_v11 = vpop.eup %2289  ;;  %v792_v12 = vadd.f32 1.0, %v2288_v7  ;;  %v607_v13 = vsub.f32 0.0, %v461_v5  ;;  %v465_v14 = vadd.f32 %v464_v10, %v3145_v32  ;;  %v466_v15 = vpop.f32.mrb[11].mxu0 }
 0x102   : > { %v2292_v16 = vpop.eup %2291  ;;  %2301 = vrcp.f32 %v791_v8  ;;  %v793_v17 = vadd.f32 1.0, %v2290_v11  ;;  %v608_v18 = vsub.f32 0.0, %v463_v9  ;;  %v467_v19 = vadd.f32 %v466_v15, %v3149_v33 }
 0x103   : > { %2303 = vrcp.f32 %v792_v12  ;;  %v794_v20 = vadd.f32 1.0, %v2292_v16  ;;  %v679_v21 = vmul.f32 1.442695, %v607_v13  ;;  %v609_v22 = vsub.f32 0.0, %v465_v14 }
 0x104   : > { %2305 = vrcp.f32 %v793_v17  ;;  %v681_v23 = vmul.f32 1.442695, %v608_v18  ;;  %v610_v24 = vsub.f32 0.0, %v467_v19 }
 0x105   : > { %2307 = vrcp.f32 %v794_v20  ;;  %v683_v25 = vmul.f32 1.442695, %v609_v22 }
 0x106   : > { %2309 = vpow2.f32 %v679_v21  ;;  %v685_v26 = vmul.f32 1.442695, %v610_v24  ;;  %v470_v27 = vpop.f32.mrb[12].mxu0 }
 0x107   : > { %v2294_v2 = vpop.eup %2293  ;;  %2311 = vpow2.f32 %v681_v23  ;;  %v471_v30 = vadd.f32 %v470_v27, %v3145_v32  ;;  %v472_v34 = vpop.f32.mrb[13].mxu0 }
 0x108   : > { %v2296_v35 = vpop.eup %2295  ;;  %v795_v36 = vadd.f32 1.0, %v2294_v2  ;;  %2313 = vpow2.f32 %v683_v25  ;;  %v473_v37 = vadd.f32 %v472_v34, %v3149_v33  ;;  %v474_v38 = vpop.f32.mrb[14].mxu0 }
 0x109   : > { %v2298_v39 = vpop.eup %2297  ;;  %v796_v40 = vadd.f32 1.0, %v2296_v35  ;;  %2315 = vpow2.f32 %v685_v26  ;;  %v611_v41 = vsub.f32 0.0, %v471_v30  ;;  %v475_v42 = vadd.f32 %v474_v38, %v3145_v32  ;;  %v476_v43 = vpop.f32.mrb[15].mxu0 }
 0x10a   : > { %v2300_v44 = vpop.eup %2299  ;;  %2317 = vrcp.f32 %v795_v36  ;;  %v797_v45 = vadd.f32 1.0, %v2298_v39  ;;  %v612_v46 = vsub.f32 0.0, %v473_v37  ;;  %v477_v47 = vadd.f32 %v476_v43, %v3149_v33 }
 0x10b   : > { %2319 = vrcp.f32 %v796_v40  ;;  %v798_v48 = vadd.f32 1.0, %v2300_v44  ;;  %v687_v49 = vmul.f32 1.442695, %v611_v41  ;;  %v613_v50 = vsub.f32 0.0, %v475_v42 }
 0x10c   : > { %v2302_v51 = vpop.eup %2301  ;;  %2321 = vrcp.f32 %v797_v45  ;;  %v689_v52 = vmul.f32 1.442695, %v612_v46  ;;  %v614_v53 = vsub.f32 0.0, %v477_v47 }
 0x10d   : > { %v2304_v54 = vpop.eup %2303  ;;  %2323 = vrcp.f32 %v798_v48  ;;  %v691_v55 = vmul.f32 1.442695, %v613_v50 }
 0x10e   : > { %v2306_v56 = vpop.eup %2305  ;;  %2325 = vpow2.f32 %v687_v49  ;;  %v693_v57 = vmul.f32 1.442695, %v614_v53  ;;  %v480_v58 = vpop.f32.mrb[16].mxu0 }
 0x10f   : > { %v2308_v59 = vpop.eup %2307  ;;  %2327 = vpow2.f32 %v689_v52  ;;  %v481_v60 = vadd.f32 %v480_v58, %v3145_v32  ;;  %v482_v61 = vpop.f32.mrb[17].mxu0  ;;  %v919_v62 = vpack.c.bf16 %v2306_v56, %v2302_v51 }
 0x110   : > { %v2310_v63 = vpop.eup %2309  ;;  %2329 = vpow2.f32 %v691_v55  ;;  %v483_v0 = vadd.f32 %v482_v61, %v3149_v33  ;;  %v484_v1 = vpop.f32.mrb[18].mxu0  ;;  %v920_v3 = vpack.c.bf16 %v2308_v59, %v2304_v54 }
 0x111   : > { %v2312_v4 = vpop.eup %2311  ;;  %v799_v5 = vadd.f32 1.0, %v2310_v63  ;;  %2331 = vpow2.f32 %v693_v57  ;;  %v615_v6 = vsub.f32 0.0, %v481_v60  ;;  %v485_v7 = vadd.f32 %v484_v1, %v3145_v32  ;;  %v486_v8 = vpop.f32.mrb[19].mxu0 }
 0x112   : > { %v2314_v9 = vpop.eup %2313  ;;  %v800_v10 = vadd.f32 1.0, %v2312_v4  ;;  %v616_v11 = vsub.f32 0.0, %v483_v0  ;;  %v487_v12 = vadd.f32 %v486_v8, %v3149_v33  ;;  %1187 = vmatprep.mubr.bf16.mxu0 %v920_v3 }
 0x113   : > { %v2316_v13 = vpop.eup %2315  ;;  %2333 = vrcp.f32 %v799_v5  ;;  %v801_v14 = vadd.f32 1.0, %v2314_v9  ;;  %v695_v15 = vmul.f32 1.442695, %v615_v6  ;;  %v617_v16 = vsub.f32 0.0, %v485_v7  ;;  %1188 = vmatmul.mubr.bf16.vlgmr.msra.gmra.mrb[64].mxu0 %v919_v62 }
 0x114   : > { %v2318_v17 = vpop.eup %2317  ;;  %2335 = vrcp.f32 %v800_v10  ;;  %v802_v18 = vadd.f32 1.0, %v2316_v13  ;;  %v697_v19 = vmul.f32 1.442695, %v616_v11  ;;  %v618_v20 = vsub.f32 0.0, %v487_v12 }
 0x115   : > { %v2320_v21 = vpop.eup %2319  ;;  %2337 = vrcp.f32 %v801_v14  ;;  %v699_v22 = vmul.f32 1.442695, %v617_v16 }
 0x116   : > { %v2322_v23 = vpop.eup %2321  ;;  %2339 = vrcp.f32 %v802_v18  ;;  %v701_v24 = vmul.f32 1.442695, %v618_v20  ;;  %v490_v25 = vpop.f32.mrb[20].mxu0 }
 0x117   : > { %v2324_v26 = vpop.eup %2323  ;;  %2341 = vpow2.f32 %v695_v15  ;;  %v491_v27 = vadd.f32 %v490_v25, %v3145_v32  ;;  %v492_v2 = vpop.f32.mrb[21].mxu0  ;;  %v921_v30 = vpack.c.bf16 %v2322_v23, %v2318_v17 }
 0x118   : > { %v2326_v34 = vpop.eup %2325  ;;  %2343 = vpow2.f32 %v697_v19  ;;  %v493_v35 = vadd.f32 %v492_v2, %v3149_v33  ;;  %v494_v36 = vpop.f32.mrb[22].mxu0  ;;  %v922_v37 = vpack.c.bf16 %v2324_v26, %v2320_v21 }
 0x119   : > { %v2328_v38 = vpop.eup %2327  ;;  %v803_v39 = vadd.f32 1.0, %v2326_v34  ;;  %2345 = vpow2.f32 %v699_v22  ;;  %v619_v40 = vsub.f32 0.0, %v491_v27  ;;  %v495_v41 = vadd.f32 %v494_v36, %v3145_v32  ;;  %v496_v42 = vpop.f32.mrb[23].mxu0 }
 0x11a   : > { %v2330_v43 = vpop.eup %2329  ;;  %v804_v44 = vadd.f32 1.0, %v2328_v38  ;;  %2347 = vpow2.f32 %v701_v24  ;;  %v620_v45 = vsub.f32 0.0, %v493_v35  ;;  %v497_v46 = vadd.f32 %v496_v42, %v3149_v33  ;;  %1197 = vmatprep.mubr.bf16.mxu0 %v922_v37 }
 0x11b   : > { %v2332_v47 = vpop.eup %2331  ;;  %2349 = vrcp.f32 %v803_v39  ;;  %v805_v48 = vadd.f32 1.0, %v2330_v43  ;;  %v703_v49 = vmul.f32 1.442695, %v619_v40  ;;  %v621_v50 = vsub.f32 0.0, %v495_v41  ;;  %1198 = vmatmul.mubr.bf16.gmra.mrb[68].mxu0 %v921_v30 }
 0x11c   : > { %2351 = vrcp.f32 %v804_v44  ;;  %v806_v51 = vadd.f32 1.0, %v2332_v47  ;;  %v705_v52 = vmul.f32 1.442695, %v620_v45  ;;  %v622_v53 = vsub.f32 0.0, %v497_v46 }
 0x11d   : > { %v2334_v54 = vpop.eup %2333  ;;  %2353 = vrcp.f32 %v805_v48  ;;  %v707_v55 = vmul.f32 1.442695, %v621_v50 }
 0x11e   : > { %v2336_v56 = vpop.eup %2335  ;;  %2355 = vrcp.f32 %v806_v51  ;;  %v709_v57 = vmul.f32 1.442695, %v622_v53  ;;  %v500_v58 = vpop.f32.mrb[24].mxu0 }
 0x11f   : > { %v2338_v59 = vpop.eup %2337  ;;  %2357 = vpow2.f32 %v703_v49  ;;  %v501_v60 = vadd.f32 %v500_v58, %v3145_v32  ;;  %v502_v61 = vpop.f32.mrb[25].mxu0 }
 0x120   : > { %v2340_v62 = vpop.eup %2339  ;;  %2359 = vpow2.f32 %v705_v52  ;;  %v503_v63 = vadd.f32 %v502_v61, %v3149_v33  ;;  %v504_v0 = vpop.f32.mrb[26].mxu0  ;;  %v923_v1 = vpack.c.bf16 %v2338_v59, %v2334_v54 }
 0x121   : > { %v2342_v3 = vpop.eup %2341  ;;  %2361 = vpow2.f32 %v707_v55  ;;  %v623_v4 = vsub.f32 0.0, %v501_v60  ;;  %v505_v5 = vadd.f32 %v504_v0, %v3145_v32  ;;  %v506_v6 = vpop.f32.mrb[27].mxu0  ;;  %v924_v7 = vpack.c.bf16 %v2340_v62, %v2336_v56 }
 0x122   : > { %v2344_v8 = vpop.eup %2343  ;;  %v807_v9 = vadd.f32 1.0, %v2342_v3  ;;  %2363 = vpow2.f32 %v709_v57  ;;  %v624_v10 = vsub.f32 0.0, %v503_v63  ;;  %v507_v11 = vadd.f32 %v506_v6, %v3149_v33 }
 0x123   : > { %v2346_v12 = vpop.eup %2345  ;;  %v808_v13 = vadd.f32 1.0, %v2344_v8  ;;  %v625_v14 = vsub.f32 0.0, %v505_v5  ;;  %1207 = vmatprep.mubr.bf16.mxu0 %v924_v7  ;;  %v711_v17 = vmul.f32 1.442695, %v623_v4 }
 0x124   : > { %v2348_v15 = vpop.eup %2347  ;;  %2365 = vrcp.f32 %v807_v9  ;;  %v809_v16 = vadd.f32 1.0, %v2346_v12  ;;  %v626_v18 = vsub.f32 0.0, %v507_v11  ;;  %1208 = vmatmul.mubr.bf16.gmra.mrb[72].mxu0 %v923_v1  ;;  %v713_v21 = vmul.f32 1.442695, %v624_v10 }
 0x125   : > { %v2350_v19 = vpop.eup %2349  ;;  %2367 = vrcp.f32 %v808_v13  ;;  %v810_v20 = vadd.f32 1.0, %v2348_v15  ;;  %v715_v23 = vmul.f32 1.442695, %v625_v14 }
 0x126   : > { %v2352_v22 = vpop.eup %2351  ;;  %2369 = vrcp.f32 %v809_v16  ;;  %v510_v24 = vpop.f32.mrb[28].mxu0  ;;  %v717_v26 = vmul.f32 1.442695, %v626_v18 }
 0x127   : > { %v2354_v25 = vpop.eup %2353  ;;  %2371 = vrcp.f32 %v810_v20  ;;  %v511_v27 = vadd.f32 %v510_v24, %v3145_v32  ;;  %v512_v2 = vpop.f32.mrb[29].mxu0 }
 0x128   : > { %v2356_v30 = vpop.eup %2355  ;;  %2373 = vpow2.f32 %v711_v17  ;;  %v513_v34 = vadd.f32 %v512_v2, %v3149_v33  ;;  %v514_v35 = vpop.f32.mrb[30].mxu0  ;;  %v925_v36 = vpack.c.bf16 %v2354_v25, %v2350_v19 }
 0x129   : > { %v2358_v37 = vpop.eup %2357  ;;  %2375 = vpow2.f32 %v713_v21  ;;  %v627_v38 = vsub.f32 0.0, %v511_v27  ;;  %v515_v39 = vadd.f32 %v514_v35, %v3145_v32  ;;  %v516_v40 = vpop.f32.mrb[31].mxu0  ;;  %v926_v41 = vpack.c.bf16 %v2356_v30, %v2352_v22 }
 0x12a   : > { %v2360_v42 = vpop.eup %2359  ;;  %v811_v43 = vadd.f32 1.0, %v2358_v37  ;;  %2377 = vpow2.f32 %v715_v23  ;;  %v628_v44 = vsub.f32 0.0, %v513_v34  ;;  %v517_v45 = vadd.f32 %v516_v40, %v3149_v33 }
 0x12b   : > { %v2362_v46 = vpop.eup %2361  ;;  %v812_v47 = vadd.f32 1.0, %v2360_v42  ;;  %2379 = vpow2.f32 %v717_v26  ;;  %v629_v48 = vsub.f32 0.0, %v515_v39  ;;  %1217 = vmatprep.mubr.bf16.mxu1 %v926_v41  ;;  %v719_v51 = vmul.f32 1.442695, %v627_v38 }
 0x12c   : > { %v2364_v49 = vpop.eup %2363  ;;  %2381 = vrcp.f32 %v811_v43  ;;  %v813_v50 = vadd.f32 1.0, %v2362_v46  ;;  %v630_v52 = vsub.f32 0.0, %v517_v45  ;;  %1218 = vmatmul.mubr.bf16.vlgmr.msra.gmra.mrb[0].mxu1 %v925_v36  ;;  %v721_v54 = vmul.f32 1.442695, %v628_v44 }
 0x12d   : > { %2383 = vrcp.f32 %v812_v47  ;;  %v814_v53 = vadd.f32 1.0, %v2364_v49  ;;  %v723_v56 = vmul.f32 1.442695, %v629_v48 }
 0x12e   : > { %v2366_v55 = vpop.eup %2365  ;;  %2385 = vrcp.f32 %v813_v50  ;;  %v520_v57 = vpop.f32.mrb[32].mxu0  ;;  %v725_v59 = vmul.f32 1.442695, %v630_v52 }
 0x12f   : > { %v2368_v58 = vpop.eup %2367  ;;  %2387 = vrcp.f32 %v814_v53  ;;  %v521_v60 = vadd.f32 %v520_v57, %v3145_v32  ;;  %v522_v61 = vpop.f32.mrb[33].mxu0 }
 0x130   : > { %v2370_v62 = vpop.eup %2369  ;;  %2389 = vpow2.f32 %v719_v51  ;;  %v523_v63 = vadd.f32 %v522_v61, %v3149_v33  ;;  %v524_v0 = vpop.f32.mrb[34].mxu0 }
 0x131   : > { %v2372_v1 = vpop.eup %2371  ;;  %2391 = vpow2.f32 %v721_v54  ;;  %v631_v3 = vsub.f32 0.0, %v521_v60  ;;  %v525_v4 = vadd.f32 %v524_v0, %v3145_v32  ;;  %v526_v5 = vpop.f32.mrb[35].mxu0  ;;  %v927_v6 = vpack.c.bf16 %v2370_v62, %v2366_v55 }
 0x132   : > { %v2374_v7 = vpop.eup %2373  ;;  %2393 = vpow2.f32 %v723_v56  ;;  %v632_v8 = vsub.f32 0.0, %v523_v63  ;;  %v527_v9 = vadd.f32 %v526_v5, %v3149_v33  ;;  %v928_v10 = vpack.c.bf16 %v2372_v1, %v2368_v58 }
 0x133   : > { %v2376_v11 = vpop.eup %2375  ;;  %v815_v12 = vadd.f32 1.0, %v2374_v7  ;;  %2395 = vpow2.f32 %v725_v59  ;;  %v633_v13 = vsub.f32 0.0, %v525_v4  ;;  %v727_v19 = vmul.f32 1.442695, %v631_v3 }
 0x134   : > { %v2378_v14 = vpop.eup %2377  ;;  %v816_v15 = vadd.f32 1.0, %v2376_v11  ;;  %v634_v16 = vsub.f32 0.0, %v527_v9  ;;  %1227 = vmatprep.mubr.bf16.mxu1 %v928_v10  ;;  %v729_v22 = vmul.f32 1.442695, %v632_v8 }
 0x135   : > { %v2380_v17 = vpop.eup %2379  ;;  %2397 = vrcp.f32 %v815_v12  ;;  %v817_v18 = vadd.f32 1.0, %v2378_v14  ;;  %1228 = vmatmul.mubr.bf16.gmra.mrb[4].mxu1 %v927_v6  ;;  %v731_v25 = vmul.f32 1.442695, %v633_v13 }
 0x136   : > { %v2382_v20 = vpop.eup %2381  ;;  %2399 = vrcp.f32 %v816_v15  ;;  %v818_v21 = vadd.f32 1.0, %v2380_v17  ;;  %v530_v23 = vpop.f32.mrb[36].mxu0  ;;  %v733_v30 = vmul.f32 1.442695, %v634_v16 }
 0x137   : > { %v2384_v24 = vpop.eup %2383  ;;  %2401 = vrcp.f32 %v817_v18  ;;  %v531_v26 = vadd.f32 %v530_v23, %v3145_v32  ;;  %v532_v27 = vpop.f32.mrb[37].mxu0 }
 0x138   : > { %v2386_v2 = vpop.eup %2385  ;;  %2403 = vrcp.f32 %v818_v21  ;;  %v533_v34 = vadd.f32 %v532_v27, %v3149_v33  ;;  %v534_v35 = vpop.f32.mrb[38].mxu0 }
 0x139   : > { %v2388_v36 = vpop.eup %2387  ;;  %2405 = vpow2.f32 %v727_v19  ;;  %v635_v37 = vsub.f32 0.0, %v531_v26  ;;  %v535_v38 = vadd.f32 %v534_v35, %v3145_v32  ;;  %v536_v39 = vpop.f32.mrb[39].mxu0  ;;  %v929_v40 = vpack.c.bf16 %v2386_v2, %v2382_v20 }
 0x13a   : > { %v2390_v41 = vpop.eup %2389  ;;  %2407 = vpow2.f32 %v729_v22  ;;  %v636_v42 = vsub.f32 0.0, %v533_v34  ;;  %v537_v43 = vadd.f32 %v536_v39, %v3149_v33  ;;  %v930_v44 = vpack.c.bf16 %v2388_v36, %v2384_v24 }
 0x13b   : > { %v2392_v45 = vpop.eup %2391  ;;  %v819_v46 = vadd.f32 1.0, %v2390_v41  ;;  %2409 = vpow2.f32 %v731_v25  ;;  %v637_v47 = vsub.f32 0.0, %v535_v38  ;;  %v735_v53 = vmul.f32 1.442695, %v635_v37 }
 0x13c   : > { %v2394_v48 = vpop.eup %2393  ;;  %v820_v49 = vadd.f32 1.0, %v2392_v45  ;;  %2411 = vpow2.f32 %v733_v30  ;;  %v638_v50 = vsub.f32 0.0, %v537_v43  ;;  %1237 = vmatprep.mubr.bf16.mxu1 %v930_v44  ;;  %v737_v55 = vmul.f32 1.442695, %v636_v42 }
 0x13d   : > { %v2396_v51 = vpop.eup %2395  ;;  %2413 = vrcp.f32 %v819_v46  ;;  %v821_v52 = vadd.f32 1.0, %v2394_v48  ;;  %1238 = vmatmul.mubr.bf16.gmra.mrb[8].mxu1 %v929_v40  ;;  %v739_v58 = vmul.f32 1.442695, %v637_v47 }
 0x13e   : > { %2415 = vrcp.f32 %v820_v49  ;;  %v822_v54 = vadd.f32 1.0, %v2396_v51  ;;  %v540_v56 = vpop.f32.mrb[40].mxu0  ;;  %v741_v62 = vmul.f32 1.442695, %v638_v50 }
 0x13f   : > { %v2398_v57 = vpop.eup %2397  ;;  %2417 = vrcp.f32 %v821_v52  ;;  %v541_v59 = vadd.f32 %v540_v56, %v3145_v32  ;;  %v542_v60 = vpop.f32.mrb[41].mxu0 }
 0x140   : > { %v2400_v61 = vpop.eup %2399  ;;  %2419 = vrcp.f32 %v822_v54  ;;  %v543_v63 = vadd.f32 %v542_v60, %v3149_v33  ;;  %v544_v0 = vpop.f32.mrb[42].mxu0 }
 0x141   : > { %v2402_v1 = vpop.eup %2401  ;;  %2421 = vpow2.f32 %v735_v53  ;;  %v639_v3 = vsub.f32 0.0, %v541_v59  ;;  %v545_v4 = vadd.f32 %v544_v0, %v3145_v32  ;;  %v546_v5 = vpop.f32.mrb[43].mxu0 }
 0x142   : > { %v2404_v6 = vpop.eup %2403  ;;  %2423 = vpow2.f32 %v737_v55  ;;  %v640_v7 = vsub.f32 0.0, %v543_v63  ;;  %v547_v8 = vadd.f32 %v546_v5, %v3149_v33  ;;  %v931_v9 = vpack.c.bf16 %v2402_v1, %v2398_v57 }
 0x143   : > { %v2406_v10 = vpop.eup %2405  ;;  %2425 = vpow2.f32 %v739_v58  ;;  %v743_v11 = vmul.f32 1.442695, %v639_v3  ;;  %v641_v12 = vsub.f32 0.0, %v545_v4  ;;  %v932_v13 = vpack.c.bf16 %v2404_v6, %v2400_v61 }
 0x144   : > { %v2408_v14 = vpop.eup %2407  ;;  %v823_v15 = vadd.f32 1.0, %v2406_v10  ;;  %2427 = vpow2.f32 %v741_v62  ;;  %v642_v16 = vsub.f32 0.0, %v547_v8  ;;  %v745_v21 = vmul.f32 1.442695, %v640_v7 }
 0x145   : > { %v2410_v17 = vpop.eup %2409  ;;  %v824_v18 = vadd.f32 1.0, %v2408_v14  ;;  %2429 = vpow2.f32 %v743_v11  ;;  %1247 = vmatprep.mubr.bf16.mxu1 %v932_v13  ;;  %v747_v25 = vmul.f32 1.442695, %v641_v12 }
 0x146   : > { %v2412_v19 = vpop.eup %2411  ;;  %2431 = vrcp.f32 %v823_v15  ;;  %v825_v20 = vadd.f32 1.0, %v2410_v17  ;;  %1248 = vmatmul.mubr.bf16.gmra.mrb[12].mxu1 %v931_v9  ;;  %v550_v22 = vpop.f32.mrb[44].mxu0  ;;  %v749_v30 = vmul.f32 1.442695, %v642_v16 }
 0x147   : > { %v2414_v23 = vpop.eup %2413  ;;  %2433 = vrcp.f32 %v824_v18  ;;  %v826_v24 = vadd.f32 1.0, %v2412_v19  ;;  %v551_v26 = vadd.f32 %v550_v22, %v3145_v32  ;;  %v552_v27 = vpop.f32.mrb[45].mxu0 }
 0x148   : > { %v2416_v2 = vpop.eup %2415  ;;  %2435 = vrcp.f32 %v825_v20  ;;  %v553_v34 = vadd.f32 %v552_v27, %v3149_v33  ;;  %v554_v35 = vpop.f32.mrb[46].mxu0 }
 0x149   : > { %v2418_v36 = vpop.eup %2417  ;;  %2437 = vrcp.f32 %v826_v24  ;;  %v643_v37 = vsub.f32 0.0, %v551_v26  ;;  %v555_v38 = vadd.f32 %v554_v35, %v3145_v32  ;;  %v556_v39 = vpop.f32.mrb[47].mxu0 }
 0x14a   : > { %v2420_v40 = vpop.eup %2419  ;;  %2439 = vpow2.f32 %v745_v21  ;;  %v557_v41 = vadd.f32 %v556_v39, %v3149_v33  ;;  %v933_v42 = vpack.c.bf16 %v2418_v36, %v2414_v23  ;;  %v644_v45 = vsub.f32 0.0, %v553_v34 }
 0x14b   : > { %v2422_v43 = vpop.eup %2421  ;;  %2441 = vpow2.f32 %v747_v25  ;;  %v751_v44 = vmul.f32 1.442695, %v643_v37  ;;  %v934_v46 = vpack.c.bf16 %v2420_v40, %v2416_v2  ;;  %v645_v49 = vsub.f32 0.0, %v555_v38 }
 0x14c   : > { %v2424_v47 = vpop.eup %2423  ;;  %v827_v48 = vadd.f32 1.0, %v2422_v43  ;;  %2443 = vpow2.f32 %v749_v30  ;;  %v646_v52 = vsub.f32 0.0, %v557_v41  ;;  %v753_v58 = vmul.f32 1.442695, %v644_v45 }
 0x14d   : > { %v2426_v50 = vpop.eup %2425  ;;  %v828_v51 = vadd.f32 1.0, %v2424_v47  ;;  %2445 = vpow2.f32 %v751_v44  ;;  %1257 = vmatprep.mubr.bf16.mxu1 %v934_v46  ;;  %v755_v63 = vmul.f32 1.442695, %v645_v49 }
 0x14e   : > { %v2428_v53 = vpop.eup %2427  ;;  %2447 = vrcp.f32 %v827_v48  ;;  %v829_v54 = vadd.f32 1.0, %v2426_v50  ;;  %1258 = vmatmul.mubr.bf16.gmra.mrb[16].mxu1 %v933_v42  ;;  %v560_v55 = vpop.f32.mrb[48].mxu0  ;;  %v757_v4 = vmul.f32 1.442695, %v646_v52 }
 0x14f   : > { %v2430_v56 = vpop.eup %2429  ;;  %2449 = vrcp.f32 %v828_v51  ;;  %v830_v57 = vadd.f32 1.0, %v2428_v53  ;;  %v561_v59 = vadd.f32 %v560_v55, %v3145_v32  ;;  %v562_v60 = vpop.f32.mrb[49].mxu0 }
 0x150   : > { %v2432_v61 = vpop.eup %2431  ;;  %2451 = vrcp.f32 %v829_v54  ;;  %v831_v62 = vadd.f32 1.0, %v2430_v56  ;;  %v563_v0 = vadd.f32 %v562_v60, %v3149_v33  ;;  %v564_v1 = vpop.f32.mrb[50].mxu0 }
 0x151   : > { %v2434_v3 = vpop.eup %2433  ;;  %2453 = vrcp.f32 %v830_v57  ;;  %v647_v5 = vsub.f32 0.0, %v561_v59  ;;  %v565_v6 = vadd.f32 %v564_v1, %v3145_v32  ;;  %v566_v7 = vpop.f32.mrb[51].mxu0 }
 0x152   : > { %v2436_v8 = vpop.eup %2435  ;;  %2455 = vrcp.f32 %v831_v62  ;;  %v567_v9 = vadd.f32 %v566_v7, %v3149_v33  ;;  %v648_v12 = vsub.f32 0.0, %v563_v0 }
 0x153   : > { %v2438_v10 = vpop.eup %2437  ;;  %2457 = vpow2.f32 %v753_v58  ;;  %v759_v11 = vmul.f32 1.442695, %v647_v5  ;;  %v935_v13 = vpack.c.bf16 %v2436_v8, %v2432_v61  ;;  %v649_v15 = vsub.f32 0.0, %v565_v6 }
 0x154   : > { %v2440_v14 = vpop.eup %2439  ;;  %2459 = vpow2.f32 %v755_v63  ;;  %v936_v16 = vpack.c.bf16 %v2438_v10, %v2434_v3  ;;  %v650_v19 = vsub.f32 0.0, %v567_v9  ;;  %v761_v25 = vmul.f32 1.442695, %v648_v12 }
 0x155   : > { %v2442_v17 = vpop.eup %2441  ;;  %v832_v18 = vadd.f32 1.0, %v2440_v14  ;;  %2461 = vpow2.f32 %v757_v4  ;;  %v763_v34 = vmul.f32 1.442695, %v649_v15 }
 0x156   : > { %v2444_v20 = vpop.eup %2443  ;;  %v833_v21 = vadd.f32 1.0, %v2442_v17  ;;  %2463 = vpow2.f32 %v759_v11  ;;  %1267 = vmatprep.mubr.bf16.mxu1 %v936_v16  ;;  %v570_v22 = vpop.f32.mrb[52].mxu0  ;;  %v765_v38 = vmul.f32 1.442695, %v650_v19 }
 0x157   : > { %v2446_v23 = vpop.eup %2445  ;;  %2465 = vrcp.f32 %v832_v18  ;;  %v834_v24 = vadd.f32 1.0, %v2444_v20  ;;  %1268 = vmatmul.mubr.bf16.gmra.mrb[20].mxu1 %v935_v13  ;;  %v571_v26 = vadd.f32 %v570_v22, %v3145_v32  ;;  %v572_v27 = vpop.f32.mrb[53].mxu0 }
 0x158   : > { %v2448_v2 = vpop.eup %2447  ;;  %2467 = vrcp.f32 %v833_v21  ;;  %v835_v30 = vadd.f32 1.0, %v2446_v23  ;;  %v573_v35 = vadd.f32 %v572_v27, %v3149_v33  ;;  %v574_v36 = vpop.f32.mrb[54].mxu0 }
 0x159   : > { %v2450_v37 = vpop.eup %2449  ;;  %2469 = vrcp.f32 %v834_v24  ;;  %v651_v39 = vsub.f32 0.0, %v571_v26  ;;  %v575_v40 = vadd.f32 %v574_v36, %v3145_v32  ;;  %v576_v41 = vpop.f32.mrb[55].mxu0 }
 0x15a   : > { %v2452_v42 = vpop.eup %2451  ;;  %2471 = vrcp.f32 %v835_v30  ;;  %v652_v43 = vsub.f32 0.0, %v573_v35  ;;  %v577_v44 = vadd.f32 %v576_v41, %v3149_v33 }
 0x15b   : > { %v2454_v45 = vpop.eup %2453  ;;  %2473 = vpow2.f32 %v761_v25  ;;  %v767_v46 = vmul.f32 1.442695, %v651_v39  ;;  %v653_v47 = vsub.f32 0.0, %v575_v40  ;;  %v937_v48 = vpack.c.bf16 %v2452_v42, %v2448_v2 }
 0x15c   : > { %v2456_v49 = vpop.eup %2455  ;;  %2475 = vpow2.f32 %v763_v34  ;;  %v769_v50 = vmul.f32 1.442695, %v652_v43  ;;  %v654_v51 = vsub.f32 0.0, %v577_v44  ;;  %v938_v52 = vpack.c.bf16 %v2454_v45, %v2450_v37 }
 0x15d   : > { %v2458_v53 = vpop.eup %2457  ;;  %2477 = vpow2.f32 %v765_v38  ;;  %v771_v59 = vmul.f32 1.442695, %v653_v47 }
 0x15e   : > { %v2460_v54 = vpop.eup %2459  ;;  %v836_v55 = vadd.f32 1.0, %v2458_v53  ;;  %2479 = vpow2.f32 %v767_v46  ;;  %1277 = vmatprep.mubr.bf16.mxu1 %v938_v52  ;;  %v580_v56 = vpop.f32.mrb[56].mxu0  ;;  %v773_v0 = vmul.f32 1.442695, %v654_v51 }
 0x15f   : > { %v2462_v57 = vpop.eup %2461  ;;  %v837_v58 = vadd.f32 1.0, %v2460_v54  ;;  %2481 = vpow2.f32 %v769_v50  ;;  %1278 = vmatmul.mubr.bf16.gmra.mrb[24].mxu1 %v937_v48  ;;  %v581_v60 = vadd.f32 %v580_v56, %v3145_v32  ;;  %v582_v61 = vpop.f32.mrb[57].mxu0 }
 0x160   : > { %v2464_v62 = vpop.eup %2463  ;;  %2483 = vrcp.f32 %v836_v55  ;;  %v838_v63 = vadd.f32 1.0, %v2462_v57  ;;  %v583_v1 = vadd.f32 %v582_v61, %v3149_v33  ;;  %v584_v3 = vpop.f32.mrb[58].mxu0 }
 0x161   : > { %v2466_v4 = vpop.eup %2465  ;;  %2485 = vrcp.f32 %v837_v58  ;;  %v839_v5 = vadd.f32 1.0, %v2464_v62  ;;  %v655_v6 = vsub.f32 0.0, %v581_v60  ;;  %v585_v7 = vadd.f32 %v584_v3, %v3145_v32  ;;  %v586_v8 = vpop.f32.mrb[59].mxu0 }
 0x162   : > { %v2468_v9 = vpop.eup %2467  ;;  %2487 = vrcp.f32 %v838_v63  ;;  %v656_v10 = vsub.f32 0.0, %v583_v1  ;;  %v587_v11 = vadd.f32 %v586_v8, %v3149_v33 }
 0x163   : > { %v2470_v12 = vpop.eup %2469  ;;  %2489 = vrcp.f32 %v839_v5  ;;  %v775_v13 = vmul.f32 1.442695, %v655_v6  ;;  %v657_v14 = vsub.f32 0.0, %v585_v7  ;;  %v939_v15 = vpack.c.bf16 %v2468_v9, %v2456_v49 }
 0x164   : > { %v2472_v16 = vpop.eup %2471  ;;  %2491 = vpow2.f32 %v771_v59  ;;  %v777_v17 = vmul.f32 1.442695, %v656_v10  ;;  %v658_v18 = vsub.f32 0.0, %v587_v11  ;;  %v940_v19 = vpack.c.bf16 %v2470_v12, %v2466_v4 }
 0x165   : > { %v2474_v20 = vpop.eup %2473  ;;  %2493 = vpow2.f32 %v773_v0  ;;  %v779_v26 = vmul.f32 1.442695, %v657_v14 }
 0x166   : > { %v2476_v21 = vpop.eup %2475  ;;  %v840_v22 = vadd.f32 1.0, %v2474_v20  ;;  %2495 = vpow2.f32 %v775_v13  ;;  %1287 = vmatprep.mubr.bf16.mxu1 %v940_v19  ;;  %v590_v23 = vpop.f32.mrb[60].mxu0  ;;  %v781_v35 = vmul.f32 1.442695, %v658_v18 }
 0x167   : > { %v2478_v24 = vpop.eup %2477  ;;  %v841_v25 = vadd.f32 1.0, %v2476_v21  ;;  %2497 = vpow2.f32 %v777_v17  ;;  %1288 = vmatmul.mubr.bf16.gmra.mrb[28].mxu1 %v939_v15  ;;  %v591_v27 = vadd.f32 %v590_v23, %v3145_v32  ;;  %v592_v2 = vpop.f32.mrb[61].mxu0 }
 0x168   : > { %v2480_v30 = vpop.eup %2479  ;;  %2499 = vrcp.f32 %v840_v22  ;;  %v842_v34 = vadd.f32 1.0, %v2478_v24  ;;  %v593_v36 = vadd.f32 %v592_v2, %v3149_v33  ;;  %v594_v37 = vpop.f32.mrb[62].mxu0 }
 0x169   : > { %v2482_v38 = vpop.eup %2481  ;;  %2501 = vrcp.f32 %v841_v25  ;;  %v843_v39 = vadd.f32 1.0, %v2480_v30  ;;  %v659_v40 = vsub.f32 0.0, %v591_v27  ;;  %v595_v41 = vadd.f32 %v594_v37, %v3145_v32  ;;  %v596_v42 = vpop.f32.mrb[63].mxu0 }
 0x16a   : > { %v2484_v43 = vpop.eup %2483  ;;  %2503 = vrcp.f32 %v842_v34  ;;  %v844_v44 = vadd.f32 1.0, %v2482_v38  ;;  %v660_v45 = vsub.f32 0.0, %v593_v36  ;;  %v597_v46 = vadd.f32 %v596_v42, %v3149_v33 }
 0x16b   : > { %v2486_v47 = vpop.eup %2485  ;;  %2505 = vrcp.f32 %v843_v39  ;;  %v783_v48 = vmul.f32 1.442695, %v659_v40  ;;  %v661_v53 = vsub.f32 0.0, %v595_v41  ;;  %v983_v40 = vld [vmem:[%s3603_s4] sm:$0x3] }
 0x16c   : > { %v2488_v49 = vpop.eup %2487  ;;  %2507 = vrcp.f32 %v844_v44  ;;  %v785_v50 = vmul.f32 1.442695, %v660_v45  ;;  %v941_v51 = vpack.c.bf16 %v2486_v47, %v2472_v16  ;;  %v662_v32 = vsub.f32 0.0, %v597_v46 }
 0x16d   : > { %v2490_v52 = vpop.eup %2489  ;;  %2509 = vpow2.f32 %v779_v26  ;;  %v942_v54 = vpack.c.bf16 %v2488_v49, %v2484_v43  ;;  %v787_v60 = vmul.f32 1.442695, %v661_v53  ;;  %v3220_v41 = vrot.slane %v983_v40, %v307_v29 }
 0x16e   : > { %v2492_v55 = vpop.eup %2491  ;;  %2511 = vpow2.f32 %v781_v35  ;;  %v789_v62 = vmul.f32 1.442695, %v662_v32  ;;  %v3224_v42 = vrot.slane %v983_v40, %v311_v31 }
 0x16f   : > { %v2494_v56 = vpop.eup %2493  ;;  %v845_v57 = vadd.f32 1.0, %v2492_v55  ;;  %2513 = vpow2.f32 %v783_v48  ;;  %1297 = vmatprep.mubr.bf16.mxu1 %v942_v54 }
 0x170   : > { %v2496_v58 = vpop.eup %2495  ;;  %v846_v33 = vadd.f32 1.0, %v2494_v56  ;;  %2515 = vpow2.f32 %v785_v50  ;;  %1298 = vmatmul.mubr.bf16.gmra.mrb[32].mxu1 %v941_v51 }
 0x171   : > { %v2498_v59 = vpop.eup %2497  ;;  %2517 = vrcp.f32 %v845_v57  ;;  %v847_v1 = vadd.f32 1.0, %v2496_v58 }
 0x172   : > { %v2500_v61 = vpop.eup %2499  ;;  %2519 = vrcp.f32 %v846_v33  ;;  %v848_v5 = vadd.f32 1.0, %v2498_v59 }
 0x173   : > { %v2502_v63 = vpop.eup %2501  ;;  %2521 = vpow2.f32 %v787_v60 }
 0x174   : > { %v2504_v0 = vpop.eup %2503  ;;  %v943_v3 = vpack.c.bf16 %v2502_v63, %v2490_v52  ;;  %2523 = vpow2.f32 %v789_v62 }
 0x175   : > { %v2506_v4 = vpop.eup %2505  ;;  %v944_v6 = vpack.c.bf16 %v2504_v0, %v2500_v61  ;;  %2525 = vrcp.f32 %v847_v1 }
 0x176   : > { %v2508_v7 = vpop.eup %2507  ;;  %2527 = vrcp.f32 %v848_v5 }
 0x177   : > { %v2510_v8 = vpop.eup %2509  ;;  %1307 = vmatprep.mubr.bf16.mxu1 %v944_v6 }
 0x178   : > { %v2512_v9 = vpop.eup %2511  ;;  %v849_v10 = vadd.f32 1.0, %v2510_v8  ;;  %1308 = vmatmul.mubr.bf16.gmra.mrb[36].mxu1 %v943_v3 }
 0x179   : > { %v2514_v11 = vpop.eup %2513  ;;  %v850_v12 = vadd.f32 1.0, %v2512_v9 }
 0x17a   : > { %v2516_v13 = vpop.eup %2515  ;;  %2529 = vrcp.f32 %v849_v10  ;;  %v851_v16 = vadd.f32 1.0, %v2514_v11 }
 0x17b   : > { %v2518_v14 = vpop.eup %2517  ;;  %2531 = vrcp.f32 %v850_v12  ;;  %v852_v18 = vadd.f32 1.0, %v2516_v13 }
 0x17c   : > { %v2520_v15 = vpop.eup %2519  ;;  %v945_v17 = vpack.c.bf16 %v2518_v14, %v2506_v4  ;;  %2533 = vrcp.f32 %v851_v16 }
 0x17d   : > { %v946_v19 = vpack.c.bf16 %v2520_v15, %v2508_v7  ;;  %v2522_v20 = vpop.eup %2521  ;;  %2535 = vrcp.f32 %v852_v18 }
 0x17e   : > { %v2524_v21 = vpop.eup %2523  ;;  %v853_v22 = vadd.f32 1.0, %v2522_v20 }
 0x17f   : > { %1317 = vmatprep.mubr.bf16.mxu1 %v946_v19  ;;  %v854_v23 = vadd.f32 1.0, %v2524_v21  ;;  %v2526_v24 = vpop.eup %2525 }
 0x180   : > { %1318 = vmatmul.mubr.bf16.gmra.mrb[40].mxu1 %v945_v17  ;;  %2537 = vrcp.f32 %v853_v22  ;;  %v2528_v25 = vpop.eup %2527 }
 0x181   : > { %2539 = vrcp.f32 %v854_v23 }
 0x184   : > { %v2530_v26 = vpop.eup %2529 }
 0x185   : > { %v2532_v27 = vpop.eup %2531  ;;  %v947_v2 = vpack.c.bf16 %v2530_v26, %v2526_v24 }
 0x186   : > { %v948_v30 = vpack.c.bf16 %v2532_v27, %v2528_v25  ;;  %v2534_v34 = vpop.eup %2533 }
 0x187   : > { %v2536_v35 = vpop.eup %2535 }
 0x188   : > { %1327 = vmatprep.mubr.bf16.mxu1 %v948_v30 }
 0x189   : > { %1328 = vmatmul.mubr.bf16.gmra.mrb[44].mxu1 %v947_v2 }
 0x18a   : > { %v2538_v36 = vpop.eup %2537 }
 0x18b   : > { %v2540_v37 = vpop.eup %2539  ;;  %v949_v38 = vpack.c.bf16 %v2538_v36, %v2534_v34 }
 0x18c   : > { %v950_v39 = vpack.c.bf16 %v2540_v37, %v2536_v35 }
 0x18e   : > { %1337 = vmatprep.mubr.bf16.mxu1 %v950_v39 }
 0x191   : > { %1338 = vmatmul.mubr.bf16.gmra.mrb[48].mxu1 %v949_v38 }
 0x1e6   : > { %v1189_v43 = vpop.f32.mrb[64].mxu0 }
 0x1e7   : > { %v1190_v44 = vadd.f32 %v1189_v43, %v3220_v41  ;;  %v1191_v45 = vpop.f32.mrb[65].mxu0 }
 0x1e8   : > { %v1192_v46 = vadd.f32 %v1191_v45, %v3224_v42  ;;  %v1193_v47 = vpop.f32.mrb[66].mxu0 }
 0x1e9   : > { %v1348_v48 = vsub.f32 0.0, %v1190_v44  ;;  %v1194_v49 = vadd.f32 %v1193_v47, %v3220_v41  ;;  %v1195_v50 = vpop.f32.mrb[67].mxu0 }
 0x1ea   : > { %v1349_v51 = vsub.f32 0.0, %v1192_v46  ;;  %v1196_v52 = vadd.f32 %v1195_v50, %v3224_v42 }
 0x1eb   : > { %v1412_v29 = vmul.f32 1.442695, %v1348_v48  ;;  %v1350_v53 = vsub.f32 0.0, %v1194_v49 }
 0x1ec   : > { %v1414_v54 = vmul.f32 1.442695, %v1349_v51  ;;  %v1351_v28 = vsub.f32 0.0, %v1196_v52 }
 0x1ed   : > { %2541 = vpow2.f32 %v1412_v29  ;;  %v1416_v31 = vmul.f32 1.442695, %v1350_v53 }
 0x1ee   : > { %2543 = vpow2.f32 %v1414_v54  ;;  %v1418_v55 = vmul.f32 1.442695, %v1351_v28  ;;  %v1199_v32 = vpop.f32.mrb[68].mxu0 }
 0x1ef   : > { %2545 = vpow2.f32 %v1416_v31  ;;  %v1200_v56 = vadd.f32 %v1199_v32, %v3220_v41  ;;  %v1201_v57 = vpop.f32.mrb[69].mxu0 }
 0x1f0   : > { %2547 = vpow2.f32 %v1418_v55  ;;  %v1202_v58 = vadd.f32 %v1201_v57, %v3224_v42  ;;  %v1203_v33 = vpop.f32.mrb[70].mxu0 }
 0x1f1   : > { %v1352_v59 = vsub.f32 0.0, %v1200_v56  ;;  %v1204_v60 = vadd.f32 %v1203_v33, %v3220_v41  ;;  %v1205_v61 = vpop.f32.mrb[71].mxu0 }
 0x1f2   : > { %v1353_v62 = vsub.f32 0.0, %v1202_v58  ;;  %v1206_v63 = vadd.f32 %v1205_v61, %v3224_v42 }
 0x1f3   : > { %v1420_v0 = vmul.f32 1.442695, %v1352_v59  ;;  %v1354_v1 = vsub.f32 0.0, %v1204_v60 }
 0x1f4   : > { %v1422_v3 = vmul.f32 1.442695, %v1353_v62  ;;  %v1355_v4 = vsub.f32 0.0, %v1206_v63 }
 0x1f5   : > { %2549 = vpow2.f32 %v1420_v0  ;;  %v1424_v5 = vmul.f32 1.442695, %v1354_v1 }
 0x1f6   : > { %2551 = vpow2.f32 %v1422_v3  ;;  %v1426_v6 = vmul.f32 1.442695, %v1355_v4 }
 0x1f7   : > { %v2542_v7 = vpop.eup %2541  ;;  %2553 = vpow2.f32 %v1424_v5  ;;  %v1209_v8 = vpop.f32.mrb[72].mxu0 }
 0x1f8   : > { %v2544_v9 = vpop.eup %2543  ;;  %v1540_v10 = vadd.f32 1.0, %v2542_v7  ;;  %2555 = vpow2.f32 %v1426_v6  ;;  %v1210_v11 = vadd.f32 %v1209_v8, %v3220_v41  ;;  %v1211_v12 = vpop.f32.mrb[73].mxu0 }
 0x1f9   : > { %v2546_v13 = vpop.eup %2545  ;;  %v1541_v14 = vadd.f32 1.0, %v2544_v9  ;;  %v1212_v15 = vadd.f32 %v1211_v12, %v3224_v42  ;;  %v1213_v16 = vpop.f32.mrb[74].mxu0 }
 0x1fa   : > { %v2548_v17 = vpop.eup %2547  ;;  %2557 = vrcp.f32 %v1540_v10  ;;  %v1542_v18 = vadd.f32 1.0, %v2546_v13  ;;  %v1356_v19 = vsub.f32 0.0, %v1210_v11  ;;  %v1214_v20 = vadd.f32 %v1213_v16, %v3220_v41  ;;  %v1215_v21 = vpop.f32.mrb[75].mxu0 }
 0x1fb   : > { %2559 = vrcp.f32 %v1541_v14  ;;  %v1543_v22 = vadd.f32 1.0, %v2548_v17  ;;  %v1357_v23 = vsub.f32 0.0, %v1212_v15  ;;  %v1216_v24 = vadd.f32 %v1215_v21, %v3224_v42 }
 0x1fc   : > { %2561 = vrcp.f32 %v1542_v18  ;;  %v1428_v25 = vmul.f32 1.442695, %v1356_v19  ;;  %v1358_v26 = vsub.f32 0.0, %v1214_v20 }
 0x1fd   : > { %2563 = vrcp.f32 %v1543_v22  ;;  %v1430_v27 = vmul.f32 1.442695, %v1357_v23  ;;  %v1359_v2 = vsub.f32 0.0, %v1216_v24 }
 0x1fe   : > { %2565 = vpow2.f32 %v1428_v25  ;;  %v1432_v30 = vmul.f32 1.442695, %v1358_v26 }
 0x1ff   : > { %v2550_v34 = vpop.eup %2549  ;;  %2567 = vpow2.f32 %v1430_v27  ;;  %v1434_v35 = vmul.f32 1.442695, %v1359_v2  ;;  %v1219_v36 = vpop.f32.mrb[0].mxu1 }
 0x200   : > { %v2552_v37 = vpop.eup %2551  ;;  %v1544_v38 = vadd.f32 1.0, %v2550_v34  ;;  %2569 = vpow2.f32 %v1432_v30  ;;  %v1220_v39 = vadd.f32 %v1219_v36, %v3220_v41  ;;  %v1221_v40 = vpop.f32.mrb[1].mxu1 }
 0x201   : > { %v2554_v43 = vpop.eup %2553  ;;  %v1545_v44 = vadd.f32 1.0, %v2552_v37  ;;  %2571 = vpow2.f32 %v1434_v35  ;;  %v1222_v45 = vadd.f32 %v1221_v40, %v3224_v42  ;;  %v1223_v46 = vpop.f32.mrb[2].mxu1 }
 0x202   : > { %v2556_v47 = vpop.eup %2555  ;;  %2573 = vrcp.f32 %v1544_v38  ;;  %v1546_v48 = vadd.f32 1.0, %v2554_v43  ;;  %v1360_v49 = vsub.f32 0.0, %v1220_v39  ;;  %v1224_v50 = vadd.f32 %v1223_v46, %v3220_v41  ;;  %v1225_v51 = vpop.f32.mrb[3].mxu1 }
 0x203   : > { %2575 = vrcp.f32 %v1545_v44  ;;  %v1547_v52 = vadd.f32 1.0, %v2556_v47  ;;  %v1361_v29 = vsub.f32 0.0, %v1222_v45  ;;  %v1226_v53 = vadd.f32 %v1225_v51, %v3224_v42 }
 0x204   : > { %v2558_v54 = vpop.eup %2557  ;;  %2577 = vrcp.f32 %v1546_v48  ;;  %v1436_v28 = vmul.f32 1.442695, %v1360_v49  ;;  %v1362_v31 = vsub.f32 0.0, %v1224_v50 }
 0x205   : > { %v2560_v55 = vpop.eup %2559  ;;  %1668 = vst [vmem:[%s3243_s18] sm:$0xff] %v2558_v54  ;;  %2579 = vrcp.f32 %v1547_v52  ;;  %v1438_v32 = vmul.f32 1.442695, %v1361_v29  ;;  %v1363_v56 = vsub.f32 0.0, %v1226_v53 }
 0x206   : > { %v2562_v57 = vpop.eup %2561  ;;  %1670 = vst.msk [vmem:[%s3243_s18 + $0x8] sm:$0xff] %vm1669_vm2, %v2560_v55  ;;  %2581 = vpow2.f32 %v1436_v28  ;;  %v1440_v58 = vmul.f32 1.442695, %v1362_v31 }
 0x207   : > { %v2564_v33 = vpop.eup %2563  ;;  %1671 = vst [vmem:[%s3243_s18 + $0x10] sm:$0xff] %v2562_v57  ;;  %2583 = vpow2.f32 %v1438_v32  ;;  %v1442_v59 = vmul.f32 1.442695, %v1363_v56 }
 0x208   : > { %v2566_v60 = vpop.eup %2565  ;;  %1672 = vst.msk [vmem:[%s3243_s18 + $0x18] sm:$0xff] %vm1669_vm2, %v2564_v33  ;;  %2585 = vpow2.f32 %v1440_v58  ;;  %v1229_v61 = vpop.f32.mrb[4].mxu1 }
 0x209   : > { %v2568_v62 = vpop.eup %2567  ;;  %v1548_v63 = vadd.f32 1.0, %v2566_v60  ;;  %2587 = vpow2.f32 %v1442_v59  ;;  %v1230_v0 = vadd.f32 %v1229_v61, %v3220_v41  ;;  %v1231_v1 = vpop.f32.mrb[5].mxu1 }
 0x20a   : > { %v2570_v3 = vpop.eup %2569  ;;  %v1549_v4 = vadd.f32 1.0, %v2568_v62  ;;  %v1232_v5 = vadd.f32 %v1231_v1, %v3224_v42  ;;  %v1233_v6 = vpop.f32.mrb[6].mxu1 }
 0x20b   : > { %v2572_v7 = vpop.eup %2571  ;;  %2589 = vrcp.f32 %v1548_v63  ;;  %v1550_v8 = vadd.f32 1.0, %v2570_v3  ;;  %v1364_v9 = vsub.f32 0.0, %v1230_v0  ;;  %v1234_v10 = vadd.f32 %v1233_v6, %v3220_v41  ;;  %v1235_v11 = vpop.f32.mrb[7].mxu1 }
 0x20c   : > { %v2574_v12 = vpop.eup %2573  ;;  %2591 = vrcp.f32 %v1549_v4  ;;  %v1551_v13 = vadd.f32 1.0, %v2572_v7  ;;  %v1365_v14 = vsub.f32 0.0, %v1232_v5  ;;  %v1236_v15 = vadd.f32 %v1235_v11, %v3224_v42 }
 0x20d   : > { %v2576_v16 = vpop.eup %2575  ;;  %1673 = vst [vmem:[%s3243_s18 + $0x20] sm:$0xff] %v2574_v12  ;;  %2593 = vrcp.f32 %v1550_v8  ;;  %v1444_v17 = vmul.f32 1.442695, %v1364_v9  ;;  %v1366_v18 = vsub.f32 0.0, %v1234_v10 }
 0x20e   : > { %v2578_v19 = vpop.eup %2577  ;;  %1674 = vst.msk [vmem:[%s3243_s18 + $0x28] sm:$0xff] %vm1669_vm2, %v2576_v16  ;;  %2595 = vrcp.f32 %v1551_v13  ;;  %v1446_v20 = vmul.f32 1.442695, %v1365_v14  ;;  %v1367_v21 = vsub.f32 0.0, %v1236_v15 }
 0x20f   : > { %v2580_v22 = vpop.eup %2579  ;;  %1675 = vst [vmem:[%s3243_s18 + $0x30] sm:$0xff] %v2578_v19  ;;  %2597 = vpow2.f32 %v1444_v17  ;;  %v1448_v23 = vmul.f32 1.442695, %v1366_v18 }
 0x210   : > { %v2582_v24 = vpop.eup %2581  ;;  %1676 = vst.msk [vmem:[%s3243_s18 + $0x38] sm:$0xff] %vm1669_vm2, %v2580_v22  ;;  %2599 = vpow2.f32 %v1446_v20  ;;  %v1450_v25 = vmul.f32 1.442695, %v1367_v21  ;;  %v1239_v26 = vpop.f32.mrb[8].mxu1 }
 0x211   : > { %v2584_v27 = vpop.eup %2583  ;;  %v1552_v2 = vadd.f32 1.0, %v2582_v24  ;;  %2601 = vpow2.f32 %v1448_v23  ;;  %v1240_v30 = vadd.f32 %v1239_v26, %v3220_v41  ;;  %v1241_v34 = vpop.f32.mrb[9].mxu1 }
 0x212   : > { %v2586_v35 = vpop.eup %2585  ;;  %v1553_v36 = vadd.f32 1.0, %v2584_v27  ;;  %2603 = vpow2.f32 %v1450_v25  ;;  %v1242_v37 = vadd.f32 %v1241_v34, %v3224_v42  ;;  %v1243_v38 = vpop.f32.mrb[10].mxu1 }
 0x213   : > { %v2588_v39 = vpop.eup %2587  ;;  %2605 = vrcp.f32 %v1552_v2  ;;  %v1554_v40 = vadd.f32 1.0, %v2586_v35  ;;  %v1368_v43 = vsub.f32 0.0, %v1240_v30  ;;  %v1244_v44 = vadd.f32 %v1243_v38, %v3220_v41  ;;  %v1245_v45 = vpop.f32.mrb[11].mxu1 }
 0x214   : > { %2607 = vrcp.f32 %v1553_v36  ;;  %v1555_v46 = vadd.f32 1.0, %v2588_v39  ;;  %v1369_v47 = vsub.f32 0.0, %v1242_v37  ;;  %v1246_v48 = vadd.f32 %v1245_v45, %v3224_v42 }
 0x215   : > { %v2590_v49 = vpop.eup %2589  ;;  %2609 = vrcp.f32 %v1554_v40  ;;  %v1452_v50 = vmul.f32 1.442695, %v1368_v43  ;;  %v1370_v51 = vsub.f32 0.0, %v1244_v44 }
 0x216   : > { %v2592_v52 = vpop.eup %2591  ;;  %1677 = vst [vmem:[%s3243_s18 + $0x40] sm:$0xff] %v2590_v49  ;;  %2611 = vrcp.f32 %v1555_v46  ;;  %v1454_v29 = vmul.f32 1.442695, %v1369_v47  ;;  %v1371_v53 = vsub.f32 0.0, %v1246_v48 }
 0x217   : > { %v2594_v54 = vpop.eup %2593  ;;  %1678 = vst.msk [vmem:[%s3243_s18 + $0x48] sm:$0xff] %vm1669_vm2, %v2592_v52  ;;  %2613 = vpow2.f32 %v1452_v50  ;;  %v1456_v28 = vmul.f32 1.442695, %v1370_v51 }
 0x218   : > { %v2596_v31 = vpop.eup %2595  ;;  %1679 = vst [vmem:[%s3243_s18 + $0x50] sm:$0xff] %v2594_v54  ;;  %2615 = vpow2.f32 %v1454_v29  ;;  %v1458_v55 = vmul.f32 1.442695, %v1371_v53 }
 0x219   : > { %v2598_v32 = vpop.eup %2597  ;;  %1680 = vst.msk [vmem:[%s3243_s18 + $0x58] sm:$0xff] %vm1669_vm2, %v2596_v31  ;;  %2617 = vpow2.f32 %v1456_v28  ;;  %v1249_v56 = vpop.f32.mrb[12].mxu1 }
 0x21a   : > { %v2600_v57 = vpop.eup %2599  ;;  %v1556_v58 = vadd.f32 1.0, %v2598_v32  ;;  %2619 = vpow2.f32 %v1458_v55  ;;  %v1250_v33 = vadd.f32 %v1249_v56, %v3220_v41  ;;  %v1251_v59 = vpop.f32.mrb[13].mxu1 }
 0x21b   : > { %v2602_v60 = vpop.eup %2601  ;;  %v1557_v61 = vadd.f32 1.0, %v2600_v57  ;;  %v1252_v62 = vadd.f32 %v1251_v59, %v3224_v42  ;;  %v1253_v63 = vpop.f32.mrb[14].mxu1 }
 0x21c   : > { %v2604_v0 = vpop.eup %2603  ;;  %2621 = vrcp.f32 %v1556_v58  ;;  %v1558_v1 = vadd.f32 1.0, %v2602_v60  ;;  %v1372_v3 = vsub.f32 0.0, %v1250_v33  ;;  %v1254_v4 = vadd.f32 %v1253_v63, %v3220_v41  ;;  %v1255_v5 = vpop.f32.mrb[15].mxu1 }
 0x21d   : > { %v2606_v6 = vpop.eup %2605  ;;  %2623 = vrcp.f32 %v1557_v61  ;;  %v1559_v7 = vadd.f32 1.0, %v2604_v0  ;;  %v1373_v8 = vsub.f32 0.0, %v1252_v62  ;;  %v1256_v9 = vadd.f32 %v1255_v5, %v3224_v42 }
 0x21e   : > { %v2608_v10 = vpop.eup %2607  ;;  %1681 = vst [vmem:[%s3243_s18 + $0x60] sm:$0xff] %v2606_v6  ;;  %2625 = vrcp.f32 %v1558_v1  ;;  %v1460_v11 = vmul.f32 1.442695, %v1372_v3  ;;  %v1374_v12 = vsub.f32 0.0, %v1254_v4 }
 0x21f   : > { %v2610_v13 = vpop.eup %2609  ;;  %1682 = vst.msk [vmem:[%s3243_s18 + $0x68] sm:$0xff] %vm1669_vm2, %v2608_v10  ;;  %2627 = vrcp.f32 %v1559_v7  ;;  %v1462_v14 = vmul.f32 1.442695, %v1373_v8  ;;  %v1375_v15 = vsub.f32 0.0, %v1256_v9 }
 0x220   : > { %v2612_v16 = vpop.eup %2611  ;;  %1683 = vst [vmem:[%s3243_s18 + $0x70] sm:$0xff] %v2610_v13  ;;  %2629 = vpow2.f32 %v1460_v11  ;;  %v1464_v17 = vmul.f32 1.442695, %v1374_v12 }
 0x221   : > { %v2614_v18 = vpop.eup %2613  ;;  %1684 = vst.msk [vmem:[%s3243_s18 + $0x78] sm:$0xff] %vm1669_vm2, %v2612_v16  ;;  %2631 = vpow2.f32 %v1462_v14  ;;  %v1466_v19 = vmul.f32 1.442695, %v1375_v15  ;;  %v1259_v20 = vpop.f32.mrb[16].mxu1 }
 0x222   : > { %v2616_v21 = vpop.eup %2615  ;;  %v1560_v22 = vadd.f32 1.0, %v2614_v18  ;;  %2633 = vpow2.f32 %v1464_v17  ;;  %v1260_v23 = vadd.f32 %v1259_v20, %v3220_v41  ;;  %v1261_v24 = vpop.f32.mrb[17].mxu1 }
 0x223   : > { %v2618_v25 = vpop.eup %2617  ;;  %v1561_v26 = vadd.f32 1.0, %v2616_v21  ;;  %2635 = vpow2.f32 %v1466_v19  ;;  %v1262_v27 = vadd.f32 %v1261_v24, %v3224_v42  ;;  %v1263_v2 = vpop.f32.mrb[18].mxu1 }
 0x224   : > { %v2620_v30 = vpop.eup %2619  ;;  %2637 = vrcp.f32 %v1560_v22  ;;  %v1562_v34 = vadd.f32 1.0, %v2618_v25  ;;  %v1376_v35 = vsub.f32 0.0, %v1260_v23  ;;  %v1264_v36 = vadd.f32 %v1263_v2, %v3220_v41  ;;  %v1265_v37 = vpop.f32.mrb[19].mxu1 }
 0x225   : > { %2639 = vrcp.f32 %v1561_v26  ;;  %v1563_v38 = vadd.f32 1.0, %v2620_v30  ;;  %v1377_v39 = vsub.f32 0.0, %v1262_v27  ;;  %v1266_v40 = vadd.f32 %v1265_v37, %v3224_v42 }
 0x226   : > { %v2622_v43 = vpop.eup %2621  ;;  %2641 = vrcp.f32 %v1562_v34  ;;  %v1468_v44 = vmul.f32 1.442695, %v1376_v35  ;;  %v1378_v45 = vsub.f32 0.0, %v1264_v36 }
 0x227   : > { %v2624_v46 = vpop.eup %2623  ;;  %1685 = vst [vmem:[%s3243_s18 + $0x80] sm:$0xff] %v2622_v43  ;;  %2643 = vrcp.f32 %v1563_v38  ;;  %v1470_v47 = vmul.f32 1.442695, %v1377_v39  ;;  %v1379_v48 = vsub.f32 0.0, %v1266_v40 }
 0x228   : > { %v2626_v49 = vpop.eup %2625  ;;  %1686 = vst.msk [vmem:[%s3243_s18 + $0x88] sm:$0xff] %vm1669_vm2, %v2624_v46  ;;  %2645 = vpow2.f32 %v1468_v44  ;;  %v1472_v50 = vmul.f32 1.442695, %v1378_v45 }
 0x229   : > { %v2628_v51 = vpop.eup %2627  ;;  %1687 = vst [vmem:[%s3243_s18 + $0x90] sm:$0xff] %v2626_v49  ;;  %2647 = vpow2.f32 %v1470_v47  ;;  %v1474_v52 = vmul.f32 1.442695, %v1379_v48 }
 0x22a   : > { %v2630_v29 = vpop.eup %2629  ;;  %1688 = vst.msk [vmem:[%s3243_s18 + $0x98] sm:$0xff] %vm1669_vm2, %v2628_v51  ;;  %2649 = vpow2.f32 %v1472_v50  ;;  %v1269_v53 = vpop.f32.mrb[20].mxu1 }
 0x22b   : > { %v2632_v54 = vpop.eup %2631  ;;  %v1564_v28 = vadd.f32 1.0, %v2630_v29  ;;  %2651 = vpow2.f32 %v1474_v52  ;;  %v1270_v31 = vadd.f32 %v1269_v53, %v3220_v41  ;;  %v1271_v55 = vpop.f32.mrb[21].mxu1 }
 0x22c   : > { %v2634_v32 = vpop.eup %2633  ;;  %v1565_v56 = vadd.f32 1.0, %v2632_v54  ;;  %v1272_v57 = vadd.f32 %v1271_v55, %v3224_v42  ;;  %v1273_v58 = vpop.f32.mrb[22].mxu1 }
 0x22d   : > { %v2636_v33 = vpop.eup %2635  ;;  %2653 = vrcp.f32 %v1564_v28  ;;  %v1566_v59 = vadd.f32 1.0, %v2634_v32  ;;  %v1380_v60 = vsub.f32 0.0, %v1270_v31  ;;  %v1274_v61 = vadd.f32 %v1273_v58, %v3220_v41  ;;  %v1275_v62 = vpop.f32.mrb[23].mxu1 }
 0x22e   : > { %v2638_v63 = vpop.eup %2637  ;;  %2655 = vrcp.f32 %v1565_v56  ;;  %v1567_v0 = vadd.f32 1.0, %v2636_v33  ;;  %v1381_v1 = vsub.f32 0.0, %v1272_v57  ;;  %v1276_v3 = vadd.f32 %v1275_v62, %v3224_v42 }
 0x22f   : > { %v2640_v4 = vpop.eup %2639  ;;  %1689 = vst [vmem:[%s3243_s18 + $0xa0] sm:$0xff] %v2638_v63  ;;  %2657 = vrcp.f32 %v1566_v59  ;;  %v1476_v5 = vmul.f32 1.442695, %v1380_v60  ;;  %v1382_v6 = vsub.f32 0.0, %v1274_v61 }
 0x230   : > { %v2642_v7 = vpop.eup %2641  ;;  %1690 = vst.msk [vmem:[%s3243_s18 + $0xa8] sm:$0xff] %vm1669_vm2, %v2640_v4  ;;  %2659 = vrcp.f32 %v1567_v0  ;;  %v1478_v8 = vmul.f32 1.442695, %v1381_v1  ;;  %v1383_v9 = vsub.f32 0.0, %v1276_v3 }
 0x231   : > { %v2644_v10 = vpop.eup %2643  ;;  %1691 = vst [vmem:[%s3243_s18 + $0xb0] sm:$0xff] %v2642_v7  ;;  %2661 = vpow2.f32 %v1476_v5  ;;  %v1480_v11 = vmul.f32 1.442695, %v1382_v6 }
 0x232   : > { %v2646_v12 = vpop.eup %2645  ;;  %1692 = vst.msk [vmem:[%s3243_s18 + $0xb8] sm:$0xff] %vm1669_vm2, %v2644_v10  ;;  %2663 = vpow2.f32 %v1478_v8  ;;  %v1482_v13 = vmul.f32 1.442695, %v1383_v9  ;;  %v1279_v14 = vpop.f32.mrb[24].mxu1 }
 0x233   : > { %v2648_v15 = vpop.eup %2647  ;;  %v1568_v16 = vadd.f32 1.0, %v2646_v12  ;;  %2665 = vpow2.f32 %v1480_v11  ;;  %v1280_v17 = vadd.f32 %v1279_v14, %v3220_v41  ;;  %v1281_v18 = vpop.f32.mrb[25].mxu1 }
 0x234   : > { %v2650_v19 = vpop.eup %2649  ;;  %v1569_v20 = vadd.f32 1.0, %v2648_v15  ;;  %2667 = vpow2.f32 %v1482_v13  ;;  %v1282_v21 = vadd.f32 %v1281_v18, %v3224_v42  ;;  %v1283_v22 = vpop.f32.mrb[26].mxu1 }
 0x235   : > { %v2652_v23 = vpop.eup %2651  ;;  %2669 = vrcp.f32 %v1568_v16  ;;  %v1570_v24 = vadd.f32 1.0, %v2650_v19  ;;  %v1384_v25 = vsub.f32 0.0, %v1280_v17  ;;  %v1284_v26 = vadd.f32 %v1283_v22, %v3220_v41  ;;  %v1285_v27 = vpop.f32.mrb[27].mxu1 }
 0x236   : > { %2671 = vrcp.f32 %v1569_v20  ;;  %v1571_v2 = vadd.f32 1.0, %v2652_v23  ;;  %v1385_v30 = vsub.f32 0.0, %v1282_v21  ;;  %v1286_v34 = vadd.f32 %v1285_v27, %v3224_v42 }
 0x237   : > { %v2654_v35 = vpop.eup %2653  ;;  %2673 = vrcp.f32 %v1570_v24  ;;  %v1484_v36 = vmul.f32 1.442695, %v1384_v25  ;;  %v1386_v37 = vsub.f32 0.0, %v1284_v26 }
 0x238   : > { %v2656_v38 = vpop.eup %2655  ;;  %1693 = vst [vmem:[%s3243_s18 + $0xc0] sm:$0xff] %v2654_v35  ;;  %2675 = vrcp.f32 %v1571_v2  ;;  %v1486_v39 = vmul.f32 1.442695, %v1385_v30  ;;  %v1387_v40 = vsub.f32 0.0, %v1286_v34 }
 0x239   : > { %v2658_v43 = vpop.eup %2657  ;;  %1694 = vst.msk [vmem:[%s3243_s18 + $0xc8] sm:$0xff] %vm1669_vm2, %v2656_v38  ;;  %2677 = vpow2.f32 %v1484_v36  ;;  %v1488_v44 = vmul.f32 1.442695, %v1386_v37 }
 0x23a   : > { %v2660_v45 = vpop.eup %2659  ;;  %1695 = vst [vmem:[%s3243_s18 + $0xd0] sm:$0xff] %v2658_v43  ;;  %2679 = vpow2.f32 %v1486_v39  ;;  %v1490_v46 = vmul.f32 1.442695, %v1387_v40  ;;  %v1289_v47 = vpop.f32.mrb[28].mxu1 }
 0x23b   : > { %v2662_v48 = vpop.eup %2661  ;;  %1696 = vst.msk [vmem:[%s3243_s18 + $0xd8] sm:$0xff] %vm1669_vm2, %v2660_v45  ;;  %2681 = vpow2.f32 %v1488_v44  ;;  %v1290_v49 = vadd.f32 %v1289_v47, %v3220_v41  ;;  %v1291_v50 = vpop.f32.mrb[29].mxu1 }
 0x23c   : > { %v2664_v51 = vpop.eup %2663  ;;  %v1572_v52 = vadd.f32 1.0, %v2662_v48  ;;  %2683 = vpow2.f32 %v1490_v46  ;;  %v1292_v29 = vadd.f32 %v1291_v50, %v3224_v42  ;;  %v1293_v53 = vpop.f32.mrb[30].mxu1 }
 0x23d   : > { %v2666_v54 = vpop.eup %2665  ;;  %v1573_v28 = vadd.f32 1.0, %v2664_v51  ;;  %v1388_v31 = vsub.f32 0.0, %v1290_v49  ;;  %v1294_v55 = vadd.f32 %v1293_v53, %v3220_v41  ;;  %v1295_v32 = vpop.f32.mrb[31].mxu1 }
 0x23e   : > { %v2668_v56 = vpop.eup %2667  ;;  %2685 = vrcp.f32 %v1572_v52  ;;  %v1574_v57 = vadd.f32 1.0, %v2666_v54  ;;  %v1389_v58 = vsub.f32 0.0, %v1292_v29  ;;  %v1296_v33 = vadd.f32 %v1295_v32, %v3224_v42 }
 0x23f   : > { %v2670_v59 = vpop.eup %2669  ;;  %2687 = vrcp.f32 %v1573_v28  ;;  %v1575_v60 = vadd.f32 1.0, %v2668_v56  ;;  %v1492_v61 = vmul.f32 1.442695, %v1388_v31  ;;  %v1390_v62 = vsub.f32 0.0, %v1294_v55 }
 0x240   : > { %v2672_v63 = vpop.eup %2671  ;;  %1697 = vst [vmem:[%s3243_s18 + $0xe0] sm:$0xff] %v2670_v59  ;;  %2689 = vrcp.f32 %v1574_v57  ;;  %v1494_v0 = vmul.f32 1.442695, %v1389_v58  ;;  %v1391_v1 = vsub.f32 0.0, %v1296_v33 }
 0x241   : > { %v2674_v3 = vpop.eup %2673  ;;  %1698 = vst.msk [vmem:[%s3243_s18 + $0xe8] sm:$0xff] %vm1669_vm2, %v2672_v63  ;;  %2691 = vrcp.f32 %v1575_v60  ;;  %v1496_v4 = vmul.f32 1.442695, %v1390_v62 }
 0x242   : > { %v2676_v5 = vpop.eup %2675  ;;  %1699 = vst [vmem:[%s3243_s18 + $0xf0] sm:$0xff] %v2674_v3  ;;  %2693 = vpow2.f32 %v1492_v61  ;;  %v1498_v6 = vmul.f32 1.442695, %v1391_v1 }
 0x243   : > { %v2678_v7 = vpop.eup %2677  ;;  %1700 = vst.msk [vmem:[%s3243_s18 + $0xf8] sm:$0xff] %vm1669_vm2, %v2676_v5  ;;  %2695 = vpow2.f32 %v1494_v0  ;;  %v1299_v8 = vpop.f32.mrb[32].mxu1 }
 0x244   : > { %v2680_v9 = vpop.eup %2679  ;;  %v1576_v10 = vadd.f32 1.0, %v2678_v7  ;;  %2697 = vpow2.f32 %v1496_v4  ;;  %v1300_v11 = vadd.f32 %v1299_v8, %v3220_v41  ;;  %v1301_v12 = vpop.f32.mrb[33].mxu1 }
 0x245   : > { %v2682_v13 = vpop.eup %2681  ;;  %v1577_v14 = vadd.f32 1.0, %v2680_v9  ;;  %2699 = vpow2.f32 %v1498_v6  ;;  %v1302_v15 = vadd.f32 %v1301_v12, %v3224_v42  ;;  %v1303_v16 = vpop.f32.mrb[34].mxu1 }
 0x246   : > { %v2684_v17 = vpop.eup %2683  ;;  %2701 = vrcp.f32 %v1576_v10  ;;  %v1578_v18 = vadd.f32 1.0, %v2682_v13  ;;  %v1392_v19 = vsub.f32 0.0, %v1300_v11  ;;  %v1304_v20 = vadd.f32 %v1303_v16, %v3220_v41  ;;  %v1305_v21 = vpop.f32.mrb[35].mxu1 }
 0x247   : > { %2703 = vrcp.f32 %v1577_v14  ;;  %v1579_v22 = vadd.f32 1.0, %v2684_v17  ;;  %v1393_v23 = vsub.f32 0.0, %v1302_v15  ;;  %v1306_v24 = vadd.f32 %v1305_v21, %v3224_v42 }
 0x248   : > { %v2686_v25 = vpop.eup %2685  ;;  %2705 = vrcp.f32 %v1578_v18  ;;  %v1500_v26 = vmul.f32 1.442695, %v1392_v19  ;;  %v1394_v27 = vsub.f32 0.0, %v1304_v20 }
 0x249   : > { %v2688_v2 = vpop.eup %2687  ;;  %1701 = vst [vmem:[%s3243_s18 + $0x100] sm:$0xff] %v2686_v25  ;;  %2707 = vrcp.f32 %v1579_v22  ;;  %v1502_v30 = vmul.f32 1.442695, %v1393_v23  ;;  %v1395_v34 = vsub.f32 0.0, %v1306_v24 }
 0x24a   : > { %v2690_v35 = vpop.eup %2689  ;;  %1702 = vst.msk [vmem:[%s3243_s18 + $0x108] sm:$0xff] %vm1669_vm2, %v2688_v2  ;;  %2709 = vpow2.f32 %v1500_v26  ;;  %v1504_v36 = vmul.f32 1.442695, %v1394_v27 }
 0x24b   : > { %v2692_v37 = vpop.eup %2691  ;;  %1703 = vst [vmem:[%s3243_s18 + $0x110] sm:$0xff] %v2690_v35  ;;  %2711 = vpow2.f32 %v1502_v30  ;;  %v1506_v38 = vmul.f32 1.442695, %v1395_v34  ;;  %v1309_v39 = vpop.f32.mrb[36].mxu1 }
 0x24c   : > { %v2694_v40 = vpop.eup %2693  ;;  %1704 = vst.msk [vmem:[%s3243_s18 + $0x118] sm:$0xff] %vm1669_vm2, %v2692_v37  ;;  %2713 = vpow2.f32 %v1504_v36  ;;  %v1310_v43 = vadd.f32 %v1309_v39, %v3220_v41  ;;  %v1311_v44 = vpop.f32.mrb[37].mxu1 }
 0x24d   : > { %v2696_v45 = vpop.eup %2695  ;;  %v1580_v46 = vadd.f32 1.0, %v2694_v40  ;;  %2715 = vpow2.f32 %v1506_v38  ;;  %v1312_v47 = vadd.f32 %v1311_v44, %v3224_v42  ;;  %v1313_v48 = vpop.f32.mrb[38].mxu1 }
 0x24e   : > { %v2698_v49 = vpop.eup %2697  ;;  %v1581_v50 = vadd.f32 1.0, %v2696_v45  ;;  %v1396_v51 = vsub.f32 0.0, %v1310_v43  ;;  %v1314_v52 = vadd.f32 %v1313_v48, %v3220_v41  ;;  %v1315_v29 = vpop.f32.mrb[39].mxu1 }
 0x24f   : > { %v2700_v53 = vpop.eup %2699  ;;  %2717 = vrcp.f32 %v1580_v46  ;;  %v1582_v54 = vadd.f32 1.0, %v2698_v49  ;;  %v1397_v28 = vsub.f32 0.0, %v1312_v47  ;;  %v1316_v31 = vadd.f32 %v1315_v29, %v3224_v42 }
 0x250   : > { %v2702_v55 = vpop.eup %2701  ;;  %2719 = vrcp.f32 %v1581_v50  ;;  %v1583_v32 = vadd.f32 1.0, %v2700_v53  ;;  %v1508_v56 = vmul.f32 1.442695, %v1396_v51  ;;  %v1398_v57 = vsub.f32 0.0, %v1314_v52 }
 0x251   : > { %v2704_v58 = vpop.eup %2703  ;;  %1705 = vst [vmem:[%s3243_s18 + $0x120] sm:$0xff] %v2702_v55  ;;  %2721 = vrcp.f32 %v1582_v54  ;;  %v1510_v33 = vmul.f32 1.442695, %v1397_v28  ;;  %v1399_v59 = vsub.f32 0.0, %v1316_v31 }
 0x252   : > { %v2706_v60 = vpop.eup %2705  ;;  %1706 = vst.msk [vmem:[%s3243_s18 + $0x128] sm:$0xff] %vm1669_vm2, %v2704_v58  ;;  %2723 = vrcp.f32 %v1583_v32  ;;  %v1512_v61 = vmul.f32 1.442695, %v1398_v57 }
 0x253   : > { %v2708_v62 = vpop.eup %2707  ;;  %1707 = vst [vmem:[%s3243_s18 + $0x130] sm:$0xff] %v2706_v60  ;;  %2725 = vpow2.f32 %v1508_v56  ;;  %v1514_v63 = vmul.f32 1.442695, %v1399_v59  ;;  %v1319_v0 = vpop.f32.mrb[40].mxu1 }
 0x254   : > { %v2710_v1 = vpop.eup %2709  ;;  %1708 = vst.msk [vmem:[%s3243_s18 + $0x138] sm:$0xff] %vm1669_vm2, %v2708_v62  ;;  %2727 = vpow2.f32 %v1510_v33  ;;  %v1320_v3 = vadd.f32 %v1319_v0, %v3220_v41  ;;  %v1321_v4 = vpop.f32.mrb[41].mxu1 }
 0x255   : > { %v2712_v5 = vpop.eup %2711  ;;  %v1584_v6 = vadd.f32 1.0, %v2710_v1  ;;  %2729 = vpow2.f32 %v1512_v61  ;;  %v1322_v7 = vadd.f32 %v1321_v4, %v3224_v42  ;;  %v1323_v8 = vpop.f32.mrb[42].mxu1 }
 0x256   : > { %v2714_v9 = vpop.eup %2713  ;;  %v1585_v10 = vadd.f32 1.0, %v2712_v5  ;;  %2731 = vpow2.f32 %v1514_v63  ;;  %v1400_v11 = vsub.f32 0.0, %v1320_v3  ;;  %v1324_v12 = vadd.f32 %v1323_v8, %v3220_v41  ;;  %v1325_v13 = vpop.f32.mrb[43].mxu1 }
 0x257   : > { %v2716_v14 = vpop.eup %2715  ;;  %2733 = vrcp.f32 %v1584_v6  ;;  %v1586_v15 = vadd.f32 1.0, %v2714_v9  ;;  %v1401_v16 = vsub.f32 0.0, %v1322_v7  ;;  %v1326_v17 = vadd.f32 %v1325_v13, %v3224_v42 }
 0x258   : > { %2735 = vrcp.f32 %v1585_v10  ;;  %v1587_v18 = vadd.f32 1.0, %v2716_v14  ;;  %v1516_v19 = vmul.f32 1.442695, %v1400_v11  ;;  %v1402_v20 = vsub.f32 0.0, %v1324_v12 }
 0x259   : > { %v2718_v21 = vpop.eup %2717  ;;  %2737 = vrcp.f32 %v1586_v15  ;;  %v1518_v22 = vmul.f32 1.442695, %v1401_v16  ;;  %v1403_v23 = vsub.f32 0.0, %v1326_v17 }
 0x25a   : > { %v2720_v24 = vpop.eup %2719  ;;  %1709 = vst [vmem:[%s3243_s18 + $0x140] sm:$0xff] %v2718_v21  ;;  %2739 = vrcp.f32 %v1587_v18  ;;  %v1520_v25 = vmul.f32 1.442695, %v1402_v20 }
 0x25b   : > { %v2722_v26 = vpop.eup %2721  ;;  %1710 = vst.msk [vmem:[%s3243_s18 + $0x148] sm:$0xff] %vm1669_vm2, %v2720_v24  ;;  %2741 = vpow2.f32 %v1516_v19  ;;  %v1522_v27 = vmul.f32 1.442695, %v1403_v23 }
 0x25c   : > { %v2724_v2 = vpop.eup %2723  ;;  %1711 = vst [vmem:[%s3243_s18 + $0x150] sm:$0xff] %v2722_v26  ;;  %2743 = vpow2.f32 %v1518_v22  ;;  %v1329_v30 = vpop.f32.mrb[44].mxu1 }
 0x25d   : > { %v2726_v34 = vpop.eup %2725  ;;  %1712 = vst.msk [vmem:[%s3243_s18 + $0x158] sm:$0xff] %vm1669_vm2, %v2724_v2  ;;  %2745 = vpow2.f32 %v1520_v25  ;;  %v1330_v35 = vadd.f32 %v1329_v30, %v3220_v41  ;;  %v1331_v36 = vpop.f32.mrb[45].mxu1 }
 0x25e   : > { %v2728_v37 = vpop.eup %2727  ;;  %v1588_v38 = vadd.f32 1.0, %v2726_v34  ;;  %2747 = vpow2.f32 %v1522_v27  ;;  %v1332_v39 = vadd.f32 %v1331_v36, %v3224_v42  ;;  %v1333_v40 = vpop.f32.mrb[46].mxu1 }
 0x25f   : > { %v2730_v43 = vpop.eup %2729  ;;  %v1589_v44 = vadd.f32 1.0, %v2728_v37  ;;  %v1404_v45 = vsub.f32 0.0, %v1330_v35  ;;  %v1334_v46 = vadd.f32 %v1333_v40, %v3220_v41  ;;  %v1335_v47 = vpop.f32.mrb[47].mxu1 }
 0x260   : > { %v2732_v48 = vpop.eup %2731  ;;  %2749 = vrcp.f32 %v1588_v38  ;;  %v1590_v49 = vadd.f32 1.0, %v2730_v43  ;;  %v1405_v50 = vsub.f32 0.0, %v1332_v39  ;;  %v1336_v51 = vadd.f32 %v1335_v47, %v3224_v42 }
 0x261   : > { %v2734_v52 = vpop.eup %2733  ;;  %2751 = vrcp.f32 %v1589_v44  ;;  %v1591_v29 = vadd.f32 1.0, %v2732_v48  ;;  %v1524_v53 = vmul.f32 1.442695, %v1404_v45  ;;  %v1406_v54 = vsub.f32 0.0, %v1334_v46 }
 0x262   : > { %v2736_v28 = vpop.eup %2735  ;;  %1713 = vst [vmem:[%s3243_s18 + $0x160] sm:$0xff] %v2734_v52  ;;  %2753 = vrcp.f32 %v1590_v49  ;;  %v1526_v31 = vmul.f32 1.442695, %v1405_v50  ;;  %v1407_v55 = vsub.f32 0.0, %v1336_v51 }
 0x263   : > { %v2738_v32 = vpop.eup %2737  ;;  %1714 = vst.msk [vmem:[%s3243_s18 + $0x168] sm:$0xff] %vm1669_vm2, %v2736_v28  ;;  %2755 = vrcp.f32 %v1591_v29  ;;  %v1528_v56 = vmul.f32 1.442695, %v1406_v54 }
 0x264   : > { %v2740_v57 = vpop.eup %2739  ;;  %1715 = vst [vmem:[%s3243_s18 + $0x170] sm:$0xff] %v2738_v32  ;;  %2757 = vpow2.f32 %v1524_v53  ;;  %v1530_v58 = vmul.f32 1.442695, %v1407_v55  ;;  %v1339_v33 = vpop.f32.mrb[48].mxu1 }
 0x265   : > { %v2742_v59 = vpop.eup %2741  ;;  %1716 = vst.msk [vmem:[%s3243_s18 + $0x178] sm:$0xff] %vm1669_vm2, %v2740_v57  ;;  %2759 = vpow2.f32 %v1526_v31  ;;  %v1340_v60 = vadd.f32 %v1339_v33, %v3220_v41  ;;  %v1341_v61 = vpop.f32.mrb[49].mxu1 }
 0x266   : > { %v2744_v62 = vpop.eup %2743  ;;  %v1592_v63 = vadd.f32 1.0, %v2742_v59  ;;  %2761 = vpow2.f32 %v1528_v56  ;;  %v1342_v0 = vadd.f32 %v1341_v61, %v3224_v42  ;;  %v1343_v1 = vpop.f32.mrb[50].mxu1 }
 0x267   : > { %v2746_v3 = vpop.eup %2745  ;;  %v1593_v4 = vadd.f32 1.0, %v2744_v62  ;;  %2763 = vpow2.f32 %v1530_v58  ;;  %v1408_v5 = vsub.f32 0.0, %v1340_v60  ;;  %v1344_v6 = vadd.f32 %v1343_v1, %v3220_v41  ;;  %v1345_v7 = vpop.f32.mrb[51].mxu1 }
 0x268   : > { %v2748_v8 = vpop.eup %2747  ;;  %2765 = vrcp.f32 %v1592_v63  ;;  %v1594_v9 = vadd.f32 1.0, %v2746_v3  ;;  %v1409_v10 = vsub.f32 0.0, %v1342_v0  ;;  %v1346_v11 = vadd.f32 %v1345_v7, %v3224_v42 }
 0x269   : > { %2767 = vrcp.f32 %v1593_v4  ;;  %v1595_v12 = vadd.f32 1.0, %v2748_v8  ;;  %v1532_v13 = vmul.f32 1.442695, %v1408_v5  ;;  %v1410_v14 = vsub.f32 0.0, %v1344_v6 }
 0x26a   : > { %v2750_v15 = vpop.eup %2749  ;;  %2769 = vrcp.f32 %v1594_v9  ;;  %v1534_v16 = vmul.f32 1.442695, %v1409_v10  ;;  %v1411_v17 = vsub.f32 0.0, %v1346_v11 }
 0x26b   : > { %v2752_v41 = vpop.eup %2751  ;;  %1717 = vst [vmem:[%s3243_s18 + $0x180] sm:$0xff] %v2750_v15  ;;  %2771 = vrcp.f32 %v1595_v12  ;;  %v1536_v18 = vmul.f32 1.442695, %v1410_v14 }
 0x26c   : > { %v2754_v19 = vpop.eup %2753  ;;  %1718 = vst.msk [vmem:[%s3243_s18 + $0x188] sm:$0xff] %vm1669_vm2, %v2752_v41  ;;  %2773 = vpow2.f32 %v1532_v13  ;;  %v1538_v20 = vmul.f32 1.442695, %v1411_v17 }
 0x26d   : > { %v2756_v42 = vpop.eup %2755  ;;  %1719 = vst [vmem:[%s3243_s18 + $0x190] sm:$0xff] %v2754_v19  ;;  %2775 = vpow2.f32 %v1534_v16 }
 0x26e   : > { %v2758_v21 = vpop.eup %2757  ;;  %1720 = vst.msk [vmem:[%s3243_s18 + $0x198] sm:$0xff] %vm1669_vm2, %v2756_v42  ;;  %2777 = vpow2.f32 %v1536_v18 }
 0x26f   : > { %v2760_v22 = vpop.eup %2759  ;;  %v1596_v23 = vadd.f32 1.0, %v2758_v21  ;;  %2779 = vpow2.f32 %v1538_v20 }
 0x270   : > { %v2762_v24 = vpop.eup %2761  ;;  %v1597_v25 = vadd.f32 1.0, %v2760_v22 }
 0x271   : > { %v2764_v26 = vpop.eup %2763  ;;  %2781 = vrcp.f32 %v1596_v23  ;;  %v1598_v27 = vadd.f32 1.0, %v2762_v24 }
 0x272   : > { %v2766_v2 = vpop.eup %2765  ;;  %2783 = vrcp.f32 %v1597_v25  ;;  %v1599_v30 = vadd.f32 1.0, %v2764_v26 }
 0x273   : > { %v2768_v34 = vpop.eup %2767  ;;  %1721 = vst [vmem:[%s3243_s18 + $0x1a0] sm:$0xff] %v2766_v2  ;;  %2785 = vrcp.f32 %v1598_v27 }
 0x274   : > { %v2770_v35 = vpop.eup %2769  ;;  %1722 = vst.msk [vmem:[%s3243_s18 + $0x1a8] sm:$0xff] %vm1669_vm2, %v2768_v34  ;;  %2787 = vrcp.f32 %v1599_v30 }
 0x275   : > { %v2772_v36 = vpop.eup %2771  ;;  %1723 = vst [vmem:[%s3243_s18 + $0x1b0] sm:$0xff] %v2770_v35 }
 0x276   : > { %v2774_v37 = vpop.eup %2773  ;;  %1724 = vst.msk [vmem:[%s3243_s18 + $0x1b8] sm:$0xff] %vm1669_vm2, %v2772_v36 }
 0x277   : > { %v2776_v38 = vpop.eup %2775  ;;  %v1600_v39 = vadd.f32 1.0, %v2774_v37 }
 0x278   : > { %v2778_v40 = vpop.eup %2777  ;;  %v1601_v43 = vadd.f32 1.0, %v2776_v38 }
 0x279   : > { %v2780_v44 = vpop.eup %2779  ;;  %2789 = vrcp.f32 %v1600_v39  ;;  %v1602_v45 = vadd.f32 1.0, %v2778_v40 }
 0x27a   : > { %2791 = vrcp.f32 %v1601_v43  ;;  %v1603_v46 = vadd.f32 1.0, %v2780_v44 }
 0x27b   : > { %v2782_v47 = vpop.eup %2781  ;;  %2793 = vrcp.f32 %v1602_v45 }
 0x27c   : > { %v2784_v48 = vpop.eup %2783  ;;  %1725 = vst [vmem:[%s3243_s18 + $0x1c0] sm:$0xff] %v2782_v47  ;;  %2795 = vrcp.f32 %v1603_v46 }
 0x27d   : > { %v2786_v49 = vpop.eup %2785  ;;  %1726 = vst.msk [vmem:[%s3243_s18 + $0x1c8] sm:$0xff] %vm1669_vm2, %v2784_v48 }
 0x27e   : > { %v2788_v50 = vpop.eup %2787  ;;  %1727 = vst [vmem:[%s3243_s18 + $0x1d0] sm:$0xff] %v2786_v49 }
 0x27f   : > { %1728 = vst.msk [vmem:[%s3243_s18 + $0x1d8] sm:$0xff] %vm1669_vm2, %v2788_v50 }
 0x281   : > { %1739 = sbr.rel (!%p2941_p4) target bundleno = 720 (0x2d0), region = 44 }
 0x283   : > { %v2790_v51 = vpop.eup %2789 }
 0x284   : > { %v2792_v52 = vpop.eup %2791  ;;  %1729 = vst [vmem:[%s3243_s18 + $0x1e0] sm:$0xff] %v2790_v51 }
 0x285   : > { %v2794_v29 = vpop.eup %2793  ;;  %1730 = vst.msk [vmem:[%s3243_s18 + $0x1e8] sm:$0xff] %vm1669_vm2, %v2792_v52 }
 0x286   : > { %v2796_v53 = vpop.eup %2795  ;;  %1731 = vst [vmem:[%s3243_s18 + $0x1f0] sm:$0xff] %v2794_v29 }
 0x287   : > { %1732 = vst.msk [vmem:[%s3243_s18 + $0x1f8] sm:$0xff] %vm1669_vm2, %v2796_v53 }
 0x288   : > { %s3615_s29 = smov (!%p1742_p8, %s1741_s29), 32 }
 0x289   : > { %s2100_s10 = sshll.u32 %s3615_s29, 8 }
 0x28a   : > { %p2088_p9 = scmp.eq.s32.totalorder %s2100_s10, 0 }
 0x28b   : > { %s3402_s11 = sshrl.u32 (!%p2088_p9), %s3615_s29, 5 }
 0x28c   : > { %1752 = sbr.rel (%p2088_p9) target bundleno = 720 (0x2d0), region = 48  ;;  %p2089_p10 = scmp.le.s32.totalorder (!%p2088_p9), %s3402_s11, 0 }
 0x293   : > { %1973 = sbr.rel (%p2089_p10) target bundleno = 699 (0x2bb), region = 96  ;;  %s3606_s21 = smov (!%p2089_p10), %s3396_s9 }
 0x294   : > { %s3607_s26 = smov (!%p2089_p10), %s3243_s18  ;;  %s3411_s6 = smov (!%p2089_p10), 0  }
 0x295   : > { %s3413_s12 = smov (!%p2089_p10), 0  }
 0x29a LB: >> { %v1765_v54 = vld [vmem:[%s2859_s26] sm:$0xff]  ;;  %v1767_v28 = vld [vmem:[%s2859_s26 + $0x10] sm:$0xff]  ;;  %s1893_s13 = sadd.s32 1, %s2863_s6  ;;  %v1829_v18 = vld [vmem:[%s2859_s26 + $0x8] sm:$0xff]  ;;  %s1759_s12 = sadd.s32 1, %s2867_s12   ;;  %s2867_s12 = sphi %s3413_s12, %s1759_s12   ;;  %s2863_s6 = sphi %s3411_s6, %s3610_s6   ;;  %s2859_s26 = sphi %s3607_s26, %s3609_s26   ;;  %s2855_s21 = sphi %s3606_s21, %s3608_s21  }
 0x29b   : >> { %v1769_v31 = vld [vmem:[%s2859_s26 + $0x20] sm:$0xff]  ;;  %1766 = vst [vmem:[%s2855_s21] sm:$0xff] %v1765_v54  ;;  %1768 = vst [vmem:[%s2855_s21 + $0x10] sm:$0xff] %v1767_v28  ;;  %v1771_v55 = vld [vmem:[%s2859_s26 + $0x30] sm:$0xff]  ;;  %p1894_p11 = scmp.ge.s32.totalorder %s1893_s13, %s3402_s11  ;;  %p1758_p12 = scmp.ge.s32.totalorder %s1759_s12, %s3402_s11 }
 0x29c   : >> { %1770 = vst [vmem:[%s2855_s21 + $0x20] sm:$0xff] %v1769_v31  ;;  %v1773_v32 = vld [vmem:[%s2859_s26 + $0x40] sm:$0xff]  ;;  %v1775_v56 = vld [vmem:[%s2859_s26 + $0x50] sm:$0xff]  ;;  %1772 = vst [vmem:[%s2855_s21 + $0x30] sm:$0xff] %v1771_v55 }
 0x29d   : >> { %1774 = vst [vmem:[%s2855_s21 + $0x40] sm:$0xff] %v1773_v32  ;;  %1776 = vst [vmem:[%s2855_s21 + $0x50] sm:$0xff] %v1775_v56  ;;  %v1777_v57 = vld [vmem:[%s2859_s26 + $0x60] sm:$0xff]  ;;  %v1779_v58 = vld [vmem:[%s2859_s26 + $0x70] sm:$0xff]  ;;  %s3617_s13 = smov (%p1894_p11, %s1893_s13), 0 }
 0x29e   : >> { %v1781_v33 = vld [vmem:[%s2859_s26 + $0x80] sm:$0xff]  ;;  %1778 = vst [vmem:[%s2855_s21 + $0x60] sm:$0xff] %v1777_v57  ;;  %1780 = vst [vmem:[%s2855_s21 + $0x70] sm:$0xff] %v1779_v58  ;;  %v1783_v59 = vld [vmem:[%s2859_s26 + $0x90] sm:$0xff]  ;;  %s2090_s14 = sshll.u32 %s3617_s13, 9  ;;  %s3610_s6 = smov %s3617_s13 }
 0x29f   : >> { %1782 = vst [vmem:[%s2855_s21 + $0x80] sm:$0xff] %v1781_v33  ;;  %v1785_v60 = vld [vmem:[%s2859_s26 + $0xa0] sm:$0xff]  ;;  %v1787_v61 = vld [vmem:[%s2859_s26 + $0xb0] sm:$0xff]  ;;  %1784 = vst [vmem:[%s2855_s21 + $0x90] sm:$0xff] %v1783_v59  ;;  %s3469_s15 = scalar_lea.vmem %s3243_s18, %s2090_s14 [#allocation2]   ;;  %s3472_s16 = scalar_lea.vmem %s3396_s9, %s2090_s14  }
 0x2a0   : >> { %1786 = vst [vmem:[%s2855_s21 + $0xa0] sm:$0xff] %v1785_v60  ;;  %1788 = vst [vmem:[%s2855_s21 + $0xb0] sm:$0xff] %v1787_v61  ;;  %v1789_v62 = vld [vmem:[%s2859_s26 + $0xc0] sm:$0xff]  ;;  %v1791_v63 = vld [vmem:[%s2859_s26 + $0xd0] sm:$0xff] }
 0x2a1   : >> { %v1793_v0 = vld [vmem:[%s2859_s26 + $0xe0] sm:$0xff]  ;;  %1790 = vst [vmem:[%s2855_s21 + $0xc0] sm:$0xff] %v1789_v62  ;;  %1792 = vst [vmem:[%s2855_s21 + $0xd0] sm:$0xff] %v1791_v63  ;;  %v1795_v1 = vld [vmem:[%s2859_s26 + $0xf0] sm:$0xff] }
 0x2a2   : >> { %1794 = vst [vmem:[%s2855_s21 + $0xe0] sm:$0xff] %v1793_v0  ;;  %v1797_v3 = vld [vmem:[%s2859_s26 + $0x100] sm:$0xff]  ;;  %v1799_v4 = vld [vmem:[%s2859_s26 + $0x110] sm:$0xff]  ;;  %1796 = vst [vmem:[%s2855_s21 + $0xf0] sm:$0xff] %v1795_v1 }
 0x2a3   : >> { %1798 = vst [vmem:[%s2855_s21 + $0x100] sm:$0xff] %v1797_v3  ;;  %1800 = vst [vmem:[%s2855_s21 + $0x110] sm:$0xff] %v1799_v4  ;;  %v1801_v5 = vld [vmem:[%s2859_s26 + $0x120] sm:$0xff]  ;;  %v1803_v6 = vld [vmem:[%s2859_s26 + $0x130] sm:$0xff] }
 0x2a4   : >> { %v1805_v7 = vld [vmem:[%s2859_s26 + $0x140] sm:$0xff]  ;;  %1802 = vst [vmem:[%s2855_s21 + $0x120] sm:$0xff] %v1801_v5  ;;  %1804 = vst [vmem:[%s2855_s21 + $0x130] sm:$0xff] %v1803_v6  ;;  %v1807_v8 = vld [vmem:[%s2859_s26 + $0x150] sm:$0xff] }
 0x2a5   : >> { %1806 = vst [vmem:[%s2855_s21 + $0x140] sm:$0xff] %v1805_v7  ;;  %v1809_v9 = vld [vmem:[%s2859_s26 + $0x160] sm:$0xff]  ;;  %v1811_v10 = vld [vmem:[%s2859_s26 + $0x170] sm:$0xff]  ;;  %1808 = vst [vmem:[%s2855_s21 + $0x150] sm:$0xff] %v1807_v8 }
 0x2a6   : >> { %1810 = vst [vmem:[%s2855_s21 + $0x160] sm:$0xff] %v1809_v9  ;;  %1812 = vst [vmem:[%s2855_s21 + $0x170] sm:$0xff] %v1811_v10  ;;  %v1813_v11 = vld [vmem:[%s2859_s26 + $0x180] sm:$0xff]  ;;  %v1815_v12 = vld [vmem:[%s2859_s26 + $0x190] sm:$0xff] }
 0x2a7   : >> { %v1817_v13 = vld [vmem:[%s2859_s26 + $0x1a0] sm:$0xff]  ;;  %1814 = vst [vmem:[%s2855_s21 + $0x180] sm:$0xff] %v1813_v11  ;;  %1816 = vst [vmem:[%s2855_s21 + $0x190] sm:$0xff] %v1815_v12  ;;  %v1819_v14 = vld [vmem:[%s2859_s26 + $0x1b0] sm:$0xff] }
 0x2a8   : >> { %1818 = vst [vmem:[%s2855_s21 + $0x1a0] sm:$0xff] %v1817_v13  ;;  %v1821_v15 = vld [vmem:[%s2859_s26 + $0x1c0] sm:$0xff]  ;;  %v1823_v16 = vld [vmem:[%s2859_s26 + $0x1d0] sm:$0xff]  ;;  %1820 = vst [vmem:[%s2855_s21 + $0x1b0] sm:$0xff] %v1819_v14 }
 0x2a9   : >> { %1822 = vst [vmem:[%s2855_s21 + $0x1c0] sm:$0xff] %v1821_v15  ;;  %1824 = vst [vmem:[%s2855_s21 + $0x1d0] sm:$0xff] %v1823_v16  ;;  %v1825_v17 = vld [vmem:[%s2859_s26 + $0x1e0] sm:$0xff]  ;;  %v1827_v41 = vld [vmem:[%s2859_s26 + $0x1f0] sm:$0xff] }
 0x2aa   : >> { %1826 = vst [vmem:[%s2855_s21 + $0x1e0] sm:$0xff] %v1825_v17  ;;  %1828 = vst [vmem:[%s2855_s21 + $0x1f0] sm:$0xff] %v1827_v41  ;;  %v1831_v19 = vld [vmem:[%s2859_s26 + $0x18] sm:$0xff]  ;;  %v1833_v20 = vld [vmem:[%s2859_s26 + $0x28] sm:$0xff] }
 0x2ab   : >> { %1830 = vst [vmem:[%s2855_s21 + $0x8] sm:$0xff] %v1829_v18  ;;  %v1835_v42 = vld [vmem:[%s2859_s26 + $0x38] sm:$0xff]  ;;  %1832 = vst [vmem:[%s2855_s21 + $0x18] sm:$0xff] %v1831_v19  ;;  %v1837_v21 = vld [vmem:[%s2859_s26 + $0x48] sm:$0xff] }
 0x2ac   : >> { %1834 = vst [vmem:[%s2855_s21 + $0x28] sm:$0xff] %v1833_v20  ;;  %1836 = vst [vmem:[%s2855_s21 + $0x38] sm:$0xff] %v1835_v42  ;;  %v1839_v22 = vld [vmem:[%s2859_s26 + $0x58] sm:$0xff]  ;;  %v1841_v23 = vld [vmem:[%s2859_s26 + $0x68] sm:$0xff] }
 0x2ad   : >> { %1838 = vst [vmem:[%s2855_s21 + $0x48] sm:$0xff] %v1837_v21  ;;  %1840 = vst [vmem:[%s2855_s21 + $0x58] sm:$0xff] %v1839_v22  ;;  %v1843_v24 = vld [vmem:[%s2859_s26 + $0x78] sm:$0xff]  ;;  %v1845_v25 = vld [vmem:[%s2859_s26 + $0x88] sm:$0xff] }
 0x2ae   : >> { %1842 = vst [vmem:[%s2855_s21 + $0x68] sm:$0xff] %v1841_v23  ;;  %v1847_v26 = vld [vmem:[%s2859_s26 + $0x98] sm:$0xff]  ;;  %1844 = vst [vmem:[%s2855_s21 + $0x78] sm:$0xff] %v1843_v24  ;;  %v1849_v27 = vld [vmem:[%s2859_s26 + $0xa8] sm:$0xff] }
 0x2af   : >> { %1846 = vst [vmem:[%s2855_s21 + $0x88] sm:$0xff] %v1845_v25  ;;  %1848 = vst [vmem:[%s2855_s21 + $0x98] sm:$0xff] %v1847_v26  ;;  %v1851_v2 = vld [vmem:[%s2859_s26 + $0xb8] sm:$0xff]  ;;  %v1853_v30 = vld [vmem:[%s2859_s26 + $0xc8] sm:$0xff] }
 0x2b0   : >> { %1850 = vst [vmem:[%s2855_s21 + $0xa8] sm:$0xff] %v1849_v27  ;;  %1852 = vst [vmem:[%s2855_s21 + $0xb8] sm:$0xff] %v1851_v2  ;;  %v1855_v34 = vld [vmem:[%s2859_s26 + $0xd8] sm:$0xff]  ;;  %v1857_v35 = vld [vmem:[%s2859_s26 + $0xe8] sm:$0xff] }
 0x2b1   : >> { %1854 = vst [vmem:[%s2855_s21 + $0xc8] sm:$0xff] %v1853_v30  ;;  %v1859_v36 = vld [vmem:[%s2859_s26 + $0xf8] sm:$0xff]  ;;  %1856 = vst [vmem:[%s2855_s21 + $0xd8] sm:$0xff] %v1855_v34  ;;  %v1861_v37 = vld [vmem:[%s2859_s26 + $0x108] sm:$0xff] }
 0x2b2   : >> { %1858 = vst [vmem:[%s2855_s21 + $0xe8] sm:$0xff] %v1857_v35  ;;  %1860 = vst [vmem:[%s2855_s21 + $0xf8] sm:$0xff] %v1859_v36  ;;  %v1863_v38 = vld [vmem:[%s2859_s26 + $0x118] sm:$0xff]  ;;  %v1865_v39 = vld [vmem:[%s2859_s26 + $0x128] sm:$0xff] }
 0x2b3   : >> { %1862 = vst [vmem:[%s2855_s21 + $0x108] sm:$0xff] %v1861_v37  ;;  %1864 = vst [vmem:[%s2855_s21 + $0x118] sm:$0xff] %v1863_v38  ;;  %v1867_v40 = vld [vmem:[%s2859_s26 + $0x138] sm:$0xff]  ;;  %v1869_v43 = vld [vmem:[%s2859_s26 + $0x148] sm:$0xff] }
 0x2b4   : >> { %1866 = vst [vmem:[%s2855_s21 + $0x128] sm:$0xff] %v1865_v39  ;;  %v1871_v44 = vld [vmem:[%s2859_s26 + $0x158] sm:$0xff]  ;;  %1868 = vst [vmem:[%s2855_s21 + $0x138] sm:$0xff] %v1867_v40  ;;  %v1873_v45 = vld [vmem:[%s2859_s26 + $0x168] sm:$0xff]  ;;  %1761 = sbr.rel (!%p1758_p12) target bundleno = 666 (0x29a), region = 102 }
 0x2b5   : >> { %1870 = vst [vmem:[%s2855_s21 + $0x148] sm:$0xff] %v1869_v43  ;;  %1872 = vst [vmem:[%s2855_s21 + $0x158] sm:$0xff] %v1871_v44  ;;  %v1875_v46 = vld [vmem:[%s2859_s26 + $0x178] sm:$0xff]  ;;  %v1877_v47 = vld [vmem:[%s2859_s26 + $0x188] sm:$0xff] }
 0x2b6   : >> { %1874 = vst [vmem:[%s2855_s21 + $0x168] sm:$0xff] %v1873_v45  ;;  %1876 = vst [vmem:[%s2855_s21 + $0x178] sm:$0xff] %v1875_v46  ;;  %v1879_v48 = vld [vmem:[%s2859_s26 + $0x198] sm:$0xff]  ;;  %v1881_v49 = vld [vmem:[%s2859_s26 + $0x1a8] sm:$0xff] }
 0x2b7   : >> { %1878 = vst [vmem:[%s2855_s21 + $0x188] sm:$0xff] %v1877_v47  ;;  %v1883_v50 = vld [vmem:[%s2859_s26 + $0x1b8] sm:$0xff]  ;;  %1880 = vst [vmem:[%s2855_s21 + $0x198] sm:$0xff] %v1879_v48  ;;  %v1885_v51 = vld [vmem:[%s2859_s26 + $0x1c8] sm:$0xff] }
 0x2b8   : >> { %1882 = vst [vmem:[%s2855_s21 + $0x1a8] sm:$0xff] %v1881_v49  ;;  %1884 = vst [vmem:[%s2855_s21 + $0x1b8] sm:$0xff] %v1883_v50  ;;  %v1887_v52 = vld [vmem:[%s2859_s26 + $0x1d8] sm:$0xff]  ;;  %v1889_v29 = vld [vmem:[%s2859_s26 + $0x1e8] sm:$0xff] }
 0x2b9   : >> { %1886 = vst [vmem:[%s2855_s21 + $0x1c8] sm:$0xff] %v1885_v51  ;;  %1888 = vst [vmem:[%s2855_s21 + $0x1d8] sm:$0xff] %v1887_v52  ;;  %v1891_v53 = vld [vmem:[%s2859_s26 + $0x1f8] sm:$0xff]  ;;  %s3609_s26 = smov %s3469_s15 }
 0x2ba   : >> { %1890 = vst [vmem:[%s2855_s21 + $0x1e8] sm:$0xff] %v1889_v29  ;;  %1892 = vst [vmem:[%s2855_s21 + $0x1f8] sm:$0xff] %v1891_v53  ;;  %s3608_s21 = smov %s3472_s16 }
 0x2bb PF: > { %s3577_s27 = sand.u32 31, %s3615_s29   ;;  %s2103_s17 = sshll.u32 %s3402_s11, 9 }
 0x2bc   : > { %s3581_s20 = scalar_lea.vmem %s3243_s18, %s2103_s17 [#allocation2]   ;;  %s1906_s23 = scalar_lea.vmem %s3396_s9, %s2103_s17  }
 0x2bd   : > { %p2095_p13 = scmp.le.s32.totalorder %s3577_s27, 0 }
 0x2be   : > { %s2869_s24 = smov (!%p2095_p13), %s1906_s23   ;;  %s2873_s28 = smov (!%p2095_p13), %s3581_s20  }
 0x2bf   : > { %1987 = sbr.rel (%p2095_p13) target bundleno = 720 (0x2d0), region = 107  ;;  %s2877_s30 = smov (!%p2095_p13), 0  }
 0x2c0   : > { %s2881_s7 = smov (!%p2095_p13), 0  }
 0x2c6 LB: >> { %v1916_v54 = vld [vmem:[%s2875_s28] sm:$0xff]  ;;  %v1918_v28 = vld [vmem:[%s2875_s28 + $0x8] sm:$0xff]  ;;  %s1920_s18 = sadd.s32 1, %s2879_s30  ;;  %s1910_s7 = sadd.s32 1, %s2883_s7   ;;  %s2883_s7 = sphi %s2881_s7, %s1910_s7   ;;  %s2879_s30 = sphi %s2877_s30, %s2878_s30   ;;  %s2875_s28 = sphi %s2873_s28, %s1925_s28   ;;  %s2871_s24 = sphi %s2869_s24, %s1926_s24  }
 0x2c7   : >> { %1917 = vst [vmem:[%s2871_s24] sm:$0xff] %v1916_v54  ;;  %1919 = vst [vmem:[%s2871_s24 + $0x8] sm:$0xff] %v1918_v28  ;;  %p1921_p0 = scmp.ge.s32.totalorder %s1920_s18, %s3577_s27  ;;  %p1909_p1 = scmp.ge.s32.totalorder %s1910_s7, %s3577_s27 }
 0x2c9   : >> { %s3619_s18 = smov (%p1921_p0, %s1920_s18), 0  ;;  %1912 = sbr.rel (!%p1909_p1) target bundleno = 710 (0x2c6), region = 113 }
 0x2ca   : >> { %s2096_s29 = sshll.u32 %s3619_s18, 4  ;;  %s2878_s30 = smov %s3619_s18  }
 0x2cb   : >> { %s1925_s28 = scalar_lea.vmem %s3581_s20, %s2096_s29 [#allocation2]   ;;  %s1926_s24 = scalar_lea.vmem %s1906_s23, %s2096_s29  }
 0x2d0 PF: > { %p12_p2 = scmp.ge.s32.totalorder %s2931_s22, 4   ;;  %s3611_s18 = smov %s2847_s19 }
 0x2d1   : > { %s3612_s19 = smov %s2939_s25  ;;  %s3613_s20 = smov %s2931_s22 }
 0x2d2   :  { %14 = sbr.rel (!%p12_p2) target bundleno = 2 (0x2), region = 124 }

</bundles_post_ra>
